<compile_context>
chip_gen: v5e
topology: v5e:2x2
jax: 0.10.0
libtpu: 0.0.40
codegen_flags: <defaults>
</compile_context>

<pallas_src>
import math
import functools

import jax
import jax.numpy as jnp
from jax.experimental import pallas as pl
from jax.experimental.pallas import tpu as pltpu

F32 = jnp.float32
BF16 = jnp.bfloat16

# Explicit scoped-VMEM budget.  The largest per-step working set (bf16 weights +
# double-buffered row tiles + the f32 FF intermediate) stays well under 32 MiB,
# which also fits v7x's 64 MiB physical VMEM per TensorCore.
_VMEM_LIMIT_BYTES = 32 * 1024 * 1024


# ----------------------------- alibi slopes (host-side, deterministic) --------

def get_slopes(n):
    def pow2_slopes(n):
        start = 2 ** (-2 ** (-(math.log2(n) - 3)))
        return [start * start ** i for i in range(n)]
    if math.log2(n).is_integer():
        return pow2_slopes(n)
    c = 2 ** math.floor(math.log2(n))
    return pow2_slopes(c) + get_slopes(2 * c)[0::2][: n - c]


# ----------------------------- small helpers ----------------------------------

def _pick_tile(n, pref):
    """`pref` if it evenly divides n, else the full extent (small test shapes)."""
    return pref if (n >= pref and n % pref == 0) else n


def _bcast_spec(shape):
    """Whole-array block re-used at every grid step (weights / biases / slopes)."""
    zeros = (0,) * len(shape)
    return pl.BlockSpec(tuple(shape), lambda *_: zeros)


def _layernorm(x, g, b, eps=1e-5):
    mu = jnp.mean(x, axis=-1, keepdims=True)
    var = jnp.mean((x - mu) ** 2, axis=-1, keepdims=True)
    return (x - mu) * jax.lax.rsqrt(var + eps) * g + b


# ----------------------------- kernel 1: LN1 + QKV projection ------------------

def ln_qkv_kernel(x_ref, g_ref, b_ref, wq_ref, wk_ref, wv_ref,
                  bq_ref, bk_ref, bv_ref, q_ref, k_ref, v_ref):
    # LayerNorm stats in f32; matmul inputs bf16 (MXU); accumulate f32.
    h = _layernorm(x_ref[...], g_ref[...], b_ref[...]).astype(BF16)
    q = jnp.dot(h, wq_ref[...], preferred_element_type=F32) + bq_ref[...]
    k = jnp.dot(h, wk_ref[...], preferred_element_type=F32) + bk_ref[...]
    v = jnp.dot(h, wv_ref[...], preferred_element_type=F32) + bv_ref[...]
    q_ref[...] = q.astype(BF16)
    k_ref[...] = k.astype(BF16)
    v_ref[...] = v.astype(BF16)


def run_ln_qkv(x2d, p, tm):
    R, C = x2d.shape
    row = pl.BlockSpec((tm, C), lambda i: (i, 0))
    args = (x2d, p['ln1_g'], p['ln1_b'], p['wq'], p['wk'], p['wv'],
            p['bq'], p['bk'], p['bv'])
    in_specs = [row] + [_bcast_spec(a.shape) for a in args[1:]]
    return pl.pallas_call(
        ln_qkv_kernel,
        grid=(R // tm,),
        in_specs=in_specs,
        out_specs=[row, row, row],
        out_shape=[jax.ShapeDtypeStruct((R, C), BF16)] * 3,
        compiler_params=pltpu.CompilerParams(
            dimension_semantics=("parallel",),
            vmem_limit_bytes=_VMEM_LIMIT_BYTES),
    )(*args)


# ----------------------------- kernel 2: flash attention with alibi ------------

def flash_attn_kernel(tq, tk, scale,
                      q_ref, k_ref, v_ref, slopes_ref, o_ref,
                      m_sc, l_sc, acc_sc):
    qi = pl.program_id(1)
    ki = pl.program_id(2)

    @pl.when(ki == 0)
    def _():
        m_sc[...] = jnp.full(m_sc.shape, -jnp.inf, dtype=m_sc.dtype)
        l_sc[...] = jnp.zeros(l_sc.shape, dtype=l_sc.dtype)
        acc_sc[...] = jnp.zeros(acc_sc.shape, dtype=acc_sc.dtype)

    q = q_ref[0]                      # (nh, tq, hd) bf16
    k = k_ref[0]                      # (nh, tk, hd) bf16
    v = v_ref[0]                      # (nh, tk, hd) bf16

    # batched-head QK^T on the MXU, f32 accumulation
    s = jnp.einsum('hqd,hkd->hqk', q, k,
                   preferred_element_type=F32) * scale        # (nh, tq, tk)

    # alibi bias rebuilt in-kernel: slope[h] * min(j - i, 0)
    row = qi * tq + jax.lax.broadcasted_iota(jnp.int32, (tq, tk), 0)
    col = ki * tk + jax.lax.broadcasted_iota(jnp.int32, (tq, tk), 1)
    dist = jnp.minimum(col - row, 0).astype(F32)               # (tq, tk)
    s = s + slopes_ref[...] * dist[None, :, :]                 # (nh,1,1)*(1,tq,tk)

    # online softmax (f32). NOTE: NON-causal on purpose (the reference builds a
    # causal attn_bias but never adds it), only the alibi bias is applied.
    m_prev = m_sc[...]
    m_new = jnp.maximum(m_prev, jnp.max(s, axis=-1, keepdims=True))
    alpha = jnp.exp(m_prev - m_new)
    p = jnp.exp(s - m_new)
    l_sc[...] = alpha * l_sc[...] + jnp.sum(p, axis=-1, keepdims=True)
    acc_sc[...] = alpha * acc_sc[...] + jnp.einsum(
        'hqk,hkd->hqd', p.astype(v.dtype), v, preferred_element_type=F32)
    m_sc[...] = m_new

    @pl.when(ki == pl.num_programs(2) - 1)
    def _():
        out = acc_sc[...] * pl.reciprocal(l_sc[...], approx=True)
        o_ref[0] = out.astype(o_ref.dtype)


def run_flash_attention(q, k, v, slopes3, scale, tq, tk):
    B, nh, T, hd = q.shape
    grid = (B, T // tq, T // tk)
    kernel = functools.partial(flash_attn_kernel, tq, tk, scale)
    q_spec = pl.BlockSpec((1, nh, tq, hd), lambda b, qi, ki: (b, 0, qi, 0))
    kv_spec = pl.BlockSpec((1, nh, tk, hd), lambda b, qi, ki: (b, 0, ki, 0))
    o_spec = pl.BlockSpec((1, nh, tq, hd), lambda b, qi, ki: (b, 0, qi, 0))
    return pl.pallas_call(
        kernel,
        grid=grid,
        in_specs=[q_spec, kv_spec, kv_spec, _bcast_spec(slopes3.shape)],
        out_specs=o_spec,
        out_shape=jax.ShapeDtypeStruct((B, nh, T, hd), BF16),
        scratch_shapes=[pltpu.VMEM((nh, tq, 1), F32),     # running max
                        pltpu.VMEM((nh, tq, 1), F32),     # running sum
                        pltpu.VMEM((nh, tq, hd), F32)],   # accumulator
        compiler_params=pltpu.CompilerParams(
            dimension_semantics=("parallel", "parallel", "arbitrary"),
            vmem_limit_bytes=_VMEM_LIMIT_BYTES),
    )(q, k, v, slopes3)


# ----------------------------- kernel 3: attn-proj + residual + LN2 + FF -------

def proj_ffn_kernel(x_ref, y_ref, pw_ref, pb_ref, g2_ref, b2_ref,
                    w1_ref, b1_ref, w2_ref, b2b_ref, o_ref):
    x = x_ref[...]                                                       # f32
    x = x + jnp.dot(y_ref[...], pw_ref[...],
                    preferred_element_type=F32) + pb_ref[...]            # residual 1
    h = _layernorm(x, g2_ref[...], b2_ref[...]).astype(BF16)
    f = jnp.dot(h, w1_ref[...], preferred_element_type=F32) + b1_ref[...]
    f = 0.5 * f * (1.0 + jax.lax.erf(f * (1.0 / math.sqrt(2.0))))        # exact GELU, f32
    f = jnp.dot(f.astype(BF16), w2_ref[...],
                preferred_element_type=F32) + b2b_ref[...]
    o_ref[...] = x + f                                                   # residual 2


def run_proj_ffn(x2d, y2d, p, tm):
    R, C = x2d.shape
    row = pl.BlockSpec((tm, C), lambda i: (i, 0))
    args = (x2d, y2d, p['proj_w'], p['proj_b'], p['ln2_g'], p['ln2_b'],
            p['ff1_w'], p['ff1_b'], p['ff2_w'], p['ff2_b'])
    in_specs = [row, row] + [_bcast_spec(a.shape) for a in args[2:]]
    return pl.pallas_call(
        proj_ffn_kernel,
        grid=(R // tm,),
        in_specs=in_specs,
        out_specs=row,
        out_shape=jax.ShapeDtypeStruct((R, C), F32),
        compiler_params=pltpu.CompilerParams(
            dimension_semantics=("parallel",),
            vmem_limit_bytes=_VMEM_LIMIT_BYTES),
    )(*args)


# ----------------------------- kernel 4: final LN + tied LM head ---------------

def lm_head_kernel(x_ref, g_ref, b_ref, w_ref, o_ref):
    # x: (B, C) f32 last-token hidden; w: (tv, C) bf16 tied embedding tile.
    h = _layernorm(x_ref[...], g_ref[...], b_ref[...]).astype(BF16)
    o_ref[...] = jax.lax.dot_general(
        h, w_ref[...],
        dimension_numbers=(((1,), (1,)), ((), ())),   # contract C with C (no emb.T)
        preferred_element_type=F32)


def run_lm_head(x_last, g, b, emb_bf16, tv):
    B, C = x_last.shape
    V = emb_bf16.shape[0]
    return pl.pallas_call(
        lm_head_kernel,
        grid=(V // tv,),
        in_specs=[_bcast_spec((B, C)), _bcast_spec(g.shape), _bcast_spec(b.shape),
                  pl.BlockSpec((tv, C), lambda j: (j, 0))],
        out_specs=pl.BlockSpec((B, tv), lambda j: (0, j)),   # lane-dense vocab tile
        out_shape=jax.ShapeDtypeStruct((B, V), F32),
        compiler_params=pltpu.CompilerParams(
            dimension_semantics=("parallel",),
            vmem_limit_bytes=_VMEM_LIMIT_BYTES),
    )(x_last, g, b, emb_bf16)


# ----------------------------- forward pass -------------------------------------

def gpt2_alibi_forward(tokens, params, num_heads):
    emb = params['emb']
    B, T = tokens.shape
    C = emb.shape[1]
    nh, hd = num_heads, C // num_heads
    R = B * T

    # token embedding lookup (host-side gather glue)
    x = jnp.take(emb, tokens, axis=0).astype(F32).reshape(R, C)
    # TODO(synk): PositionalEncoding is computed-then-discarded in the reference
    # forward, so it is deliberately not applied. All dropouts are eval-mode identity.

    tm = _pick_tile(R, 256)        # row tile over (B*T)
    tq = _pick_tile(T, 128)        # query tile
    tk = _pick_tile(T, 128)        # key/value tile
    scale = 1.0 / math.sqrt(hd)
    slopes3 = params['slopes3']    # (nh, 1, 1) f32

    def split_heads(a):            # (R, C) -> (B, nh, T, hd), host-side XLA relayout
        return a.reshape(B, T, nh, hd).transpose(0, 2, 1, 3)

    # TODO(synk): layers are a Python loop (weights could be stacked into (L, ...)
    # arrays with a layer grid axis; kept unstacked for clarity/robustness).
    for p in params['blocks']:
        q2, k2, v2 = run_ln_qkv(x, p, tm)
        oh = run_flash_attention(split_heads(q2), split_heads(k2), split_heads(v2),
                                 slopes3, scale, tq, tk)
        y2 = oh.transpose(0, 2, 1, 3).reshape(R, C)          # merge heads (host glue)
        x = run_proj_ffn(x, y2, p, tm)

    # final LayerNorm is per-token -> slice the last token on the host first so
    # the LM-head kernel only DMAs (B, C) instead of (B, T, C).
    x_last = x.reshape(B, T, C)[:, T - 1, :]
    tv = _pick_tile(emb.shape[0], 512)
    return run_lm_head(x_last, params['lnf_g'], params['lnf_b'],
                       params['emb_bf16'], tv)


# ----------------------------- deterministic parameter init ---------------------

def init_params(key, vocab, d_model, dff, num_layer, num_heads):
    std = 0.02
    keys = jax.random.split(key, 1 + num_layer)
    emb = jax.random.normal(keys[0], (vocab, d_model), F32) * std
    proj_std = 0.02 / math.sqrt(2 * num_layer)
    blocks = []
    for l in range(num_layer):
        ks = jax.random.split(keys[1 + l], 6)
        blocks.append(dict(
            ln1_g=jnp.ones((1, d_model), F32),
            ln1_b=jnp.zeros((1, d_model), F32),
            wq=(jax.random.normal(ks[0], (d_model, d_model), F32) * std).astype(BF16),
            wk=(jax.random.normal(ks[1], (d_model, d_model), F32) * std).astype(BF16),
            wv=(jax.random.normal(ks[2], (d_model, d_model), F32) * std).astype(BF16),
            bq=jnp.zeros((1, d_model), F32),
            bk=jnp.zeros((1, d_model), F32),
            bv=jnp.zeros((1, d_model), F32),
            proj_w=(jax.random.normal(ks[3], (d_model, d_model), F32) * proj_std).astype(BF16),
            proj_b=jnp.zeros((1, d_model), F32),
            ln2_g=jnp.ones((1, d_model), F32),
            ln2_b=jnp.zeros((1, d_model), F32),
            ff1_w=(jax.random.normal(ks[4], (d_model, dff), F32) * std).astype(BF16),
            ff1_b=jnp.zeros((1, dff), F32),
            ff2_w=(jax.random.normal(ks[5], (dff, d_model), F32) * std).astype(BF16),
            ff2_b=jnp.zeros((1, d_model), F32),
        ))
    slopes3 = jnp.asarray(get_slopes(num_heads), F32).reshape(num_heads, 1, 1)
    return dict(
        emb=emb,
        emb_bf16=emb.astype(BF16),            # weight-tied LM head operand (bf16 MXU)
        blocks=blocks,
        lnf_g=jnp.ones((1, d_model), F32),
        lnf_b=jnp.zeros((1, d_model), F32),
        slopes3=slopes3,
    )


# ----------------------------- main ---------------------------------------------

if __name__ == "__main__":
    vocab_size, d_model, num_heads, dff, num_layer = 64, 32, 4, 64, 2
    B, T = 2, 8

    key = jax.random.PRNGKey(0)
    kp, kt = jax.random.split(key)
    params = init_params(kp, vocab_size, d_model, dff, num_layer, num_heads)
    tokens = jax.random.randint(kt, (B, T), 0, vocab_size)

    fwd = jax.jit(functools.partial(gpt2_alibi_forward, num_heads=num_heads))
    logits = jax.block_until_ready(fwd(tokens, params))

    assert logits.shape == (B, vocab_size)
    assert bool(jnp.all(jnp.isfinite(logits)))
    print("KERNEL_OK")
</pallas_src>

<mosaic_0001>
module attributes {stable_mosaic.version = 11 : i64} {
  func.func @ln_qkv_kernel(%arg0: i32, %arg1: memref<16x32xf32, #tpu.memory_space<vmem>>, %arg2: memref<1x32xf32, #tpu.memory_space<vmem>>, %arg3: memref<1x32xf32, #tpu.memory_space<vmem>>, %arg4: memref<32x32xbf16, #tpu.memory_space<vmem>>, %arg5: memref<32x32xbf16, #tpu.memory_space<vmem>>, %arg6: memref<32x32xbf16, #tpu.memory_space<vmem>>, %arg7: memref<1x32xf32, #tpu.memory_space<vmem>>, %arg8: memref<1x32xf32, #tpu.memory_space<vmem>>, %arg9: memref<1x32xf32, #tpu.memory_space<vmem>>, %arg10: memref<16x32xbf16, #tpu.memory_space<vmem>>, %arg11: memref<16x32xbf16, #tpu.memory_space<vmem>>, %arg12: memref<16x32xbf16, #tpu.memory_space<vmem>>) attributes {dimension_semantics = [#tpu.dimension_semantics<parallel>], iteration_bounds = array<i64: 1>, scalar_prefetch = 0 : i64, scratch_operands = 0 : i64, tpu.core_type = #tpu.core_type<tc>, window_params = [{transform_indices = @transform_0, window_bounds = array<i64: 16, 32>}, {pipeline_mode = #tpu.pipeline_mode<synchronous>, transform_indices = @transform_1, window_bounds = array<i64: 1, 32>}, {pipeline_mode = #tpu.pipeline_mode<synchronous>, transform_indices = @transform_2, window_bounds = array<i64: 1, 32>}, {pipeline_mode = #tpu.pipeline_mode<synchronous>, transform_indices = @transform_3, window_bounds = array<i64: 32, 32>}, {pipeline_mode = #tpu.pipeline_mode<synchronous>, transform_indices = @transform_4, window_bounds = array<i64: 32, 32>}, {pipeline_mode = #tpu.pipeline_mode<synchronous>, transform_indices = @transform_5, window_bounds = array<i64: 32, 32>}, {pipeline_mode = #tpu.pipeline_mode<synchronous>, transform_indices = @transform_6, window_bounds = array<i64: 1, 32>}, {pipeline_mode = #tpu.pipeline_mode<synchronous>, transform_indices = @transform_7, window_bounds = array<i64: 1, 32>}, {pipeline_mode = #tpu.pipeline_mode<synchronous>, transform_indices = @transform_8, window_bounds = array<i64: 1, 32>}, {transform_indices = @transform_9, window_bounds = array<i64: 16, 32>}, {transform_indices = @transform_10, window_bounds = array<i64: 16, 32>}, {transform_indices = @transform_11, window_bounds = array<i64: 16, 32>}]} {
    %c0 = arith.constant 0 : index
    %c0_0 = arith.constant 0 : index
    %0 = vector.load %arg1[%c0, %c0_0] : memref<16x32xf32, #tpu.memory_space<vmem>>, vector<16x32xf32>
    %c0_1 = arith.constant 0 : index
    %c0_2 = arith.constant 0 : index
    %1 = vector.load %arg2[%c0_1, %c0_2] : memref<1x32xf32, #tpu.memory_space<vmem>>, vector<1x32xf32>
    %c0_3 = arith.constant 0 : index
    %c0_4 = arith.constant 0 : index
    %2 = vector.load %arg3[%c0_3, %c0_4] : memref<1x32xf32, #tpu.memory_space<vmem>>, vector<1x32xf32>
    %cst = arith.constant dense<0.000000e+00> : vector<16xf32>
    %3 = vector.multi_reduction <add>, %0, %cst [1] : vector<16x32xf32> to vector<16xf32>
    %4 = vector.shape_cast %3 : vector<16xf32> to vector<16x1xf32>
    %cst_5 = arith.constant 3.200000e+01 : f32
    %5 = vector.broadcast %cst_5 : f32 to vector<16x1xf32>
    %6 = arith.divf %4, %5 : vector<16x1xf32>
    %7 = vector.broadcast %6 : vector<16x1xf32> to vector<16x32xf32>
    %8 = arith.subf %0, %7 : vector<16x32xf32>
    %9 = arith.mulf %8, %8 : vector<16x32xf32>
    %cst_6 = arith.constant dense<0.000000e+00> : vector<16xf32>
    %10 = vector.multi_reduction <add>, %9, %cst_6 [1] : vector<16x32xf32> to vector<16xf32>
    %11 = vector.shape_cast %10 : vector<16xf32> to vector<16x1xf32>
    %cst_7 = arith.constant 3.200000e+01 : f32
    %12 = vector.broadcast %cst_7 : f32 to vector<16x1xf32>
    %13 = arith.divf %11, %12 : vector<16x1xf32>
    %14 = vector.broadcast %6 : vector<16x1xf32> to vector<16x32xf32>
    %15 = arith.subf %0, %14 : vector<16x32xf32>
    %cst_8 = arith.constant 9.99999974E-6 : f32
    %16 = vector.broadcast %cst_8 : f32 to vector<16x1xf32>
    %17 = arith.addf %13, %16 : vector<16x1xf32>
    %18 = math.rsqrt %17 : vector<16x1xf32>
    %19 = vector.broadcast %18 : vector<16x1xf32> to vector<16x32xf32>
    %20 = arith.mulf %15, %19 : vector<16x32xf32>
    %21 = vector.broadcast %1 : vector<1x32xf32> to vector<16x32xf32>
    %22 = arith.mulf %20, %21 : vector<16x32xf32>
    %23 = vector.broadcast %2 : vector<1x32xf32> to vector<16x32xf32>
    %24 = arith.addf %22, %23 : vector<16x32xf32>
    %25 = arith.truncf %24 : vector<16x32xf32> to vector<16x32xbf16>
    %c0_9 = arith.constant 0 : index
    %c0_10 = arith.constant 0 : index
    %26 = vector.load %arg4[%c0_9, %c0_10] : memref<32x32xbf16, #tpu.memory_space<vmem>>, vector<32x32xbf16>
    %cst_11 = arith.constant dense<0.000000e+00> : vector<16x32xf32>
    %27 = tpu.matmul %25, %26, %cst_11 {dimension_numbers = #tpu.dot_dimension_numbers<[1], [0], [0], [1], [0, 0, 1, 1], [], []>} : vector<16x32xbf16>, vector<32x32xbf16>, vector<16x32xf32> -> vector<16x32xf32>
    %c0_12 = arith.constant 0 : index
    %c0_13 = arith.constant 0 : index
    %28 = vector.load %arg7[%c0_12, %c0_13] : memref<1x32xf32, #tpu.memory_space<vmem>>, vector<1x32xf32>
    %29 = vector.broadcast %28 : vector<1x32xf32> to vector<16x32xf32>
    %30 = arith.addf %27, %29 : vector<16x32xf32>
    %c0_14 = arith.constant 0 : index
    %c0_15 = arith.constant 0 : index
    %31 = vector.load %arg5[%c0_14, %c0_15] : memref<32x32xbf16, #tpu.memory_space<vmem>>, vector<32x32xbf16>
    %cst_16 = arith.constant dense<0.000000e+00> : vector<16x32xf32>
    %32 = tpu.matmul %25, %31, %cst_16 {dimension_numbers = #tpu.dot_dimension_numbers<[1], [0], [0], [1], [0, 0, 1, 1], [], []>} : vector<16x32xbf16>, vector<32x32xbf16>, vector<16x32xf32> -> vector<16x32xf32>
    %c0_17 = arith.constant 0 : index
    %c0_18 = arith.constant 0 : index
    %33 = vector.load %arg8[%c0_17, %c0_18] : memref<1x32xf32, #tpu.memory_space<vmem>>, vector<1x32xf32>
    %34 = vector.broadcast %33 : vector<1x32xf32> to vector<16x32xf32>
    %35 = arith.addf %32, %34 : vector<16x32xf32>
    %c0_19 = arith.constant 0 : index
    %c0_20 = arith.constant 0 : index
    %36 = vector.load %arg6[%c0_19, %c0_20] : memref<32x32xbf16, #tpu.memory_space<vmem>>, vector<32x32xbf16>
    %cst_21 = arith.constant dense<0.000000e+00> : vector<16x32xf32>
    %37 = tpu.matmul %25, %36, %cst_21 {dimension_numbers = #tpu.dot_dimension_numbers<[1], [0], [0], [1], [0, 0, 1, 1], [], []>} : vector<16x32xbf16>, vector<32x32xbf16>, vector<16x32xf32> -> vector<16x32xf32>
    %c0_22 = arith.constant 0 : index
    %c0_23 = arith.constant 0 : index
    %38 = vector.load %arg9[%c0_22, %c0_23] : memref<1x32xf32, #tpu.memory_space<vmem>>, vector<1x32xf32>
    %39 = vector.broadcast %38 : vector<1x32xf32> to vector<16x32xf32>
    %40 = arith.addf %37, %39 : vector<16x32xf32>
    %41 = arith.truncf %30 : vector<16x32xf32> to vector<16x32xbf16>
    %c0_24 = arith.constant 0 : index
    %c0_25 = arith.constant 0 : index
    %42 = vector.load %arg10[%c0_24, %c0_25] : memref<16x32xbf16, #tpu.memory_space<vmem>>, vector<16x32xbf16>
    tpu.vector_store %arg10[%c0_24, %c0_25], %41 {strides = array<i32>} : memref<16x32xbf16, #tpu.memory_space<vmem>>, vector<16x32xbf16>,
    %43 = arith.truncf %35 : vector<16x32xf32> to vector<16x32xbf16>
    %c0_26 = arith.constant 0 : index
    %c0_27 = arith.constant 0 : index
    %44 = vector.load %arg11[%c0_26, %c0_27] : memref<16x32xbf16, #tpu.memory_space<vmem>>, vector<16x32xbf16>
    tpu.vector_store %arg11[%c0_26, %c0_27], %43 {strides = array<i32>} : memref<16x32xbf16, #tpu.memory_space<vmem>>, vector<16x32xbf16>,
    %45 = arith.truncf %40 : vector<16x32xf32> to vector<16x32xbf16>
    %c0_28 = arith.constant 0 : index
    %c0_29 = arith.constant 0 : index
    %46 = vector.load %arg12[%c0_28, %c0_29] : memref<16x32xbf16, #tpu.memory_space<vmem>>, vector<16x32xbf16>
    tpu.vector_store %arg12[%c0_28, %c0_29], %45 {strides = array<i32>} : memref<16x32xbf16, #tpu.memory_space<vmem>>, vector<16x32xbf16>,
    return
  }
  func.func @transform_0(%arg0: i32) -> (i32, i32) {
    %c0_i32 = arith.constant 0 : i32
    %c0_i32_0 = arith.constant 0 : i32
    return %arg0, %c0_i32 : i32, i32
  }
  func.func @transform_1(%arg0: i32) -> (i32, i32) {
    %c0_i32 = arith.constant 0 : i32
    %c0_i32_0 = arith.constant 0 : i32
    %c0_i32_1 = arith.constant 0 : i32
    return %c0_i32, %c0_i32_0 : i32, i32
  }
  func.func @transform_2(%arg0: i32) -> (i32, i32) {
    %c0_i32 = arith.constant 0 : i32
    %c0_i32_0 = arith.constant 0 : i32
    %c0_i32_1 = arith.constant 0 : i32
    return %c0_i32, %c0_i32_0 : i32, i32
  }
  func.func @transform_3(%arg0: i32) -> (i32, i32) {
    %c0_i32 = arith.constant 0 : i32
    %c0_i32_0 = arith.constant 0 : i32
    %c0_i32_1 = arith.constant 0 : i32
    return %c0_i32, %c0_i32_0 : i32, i32
  }
  func.func @transform_4(%arg0: i32) -> (i32, i32) {
    %c0_i32 = arith.constant 0 : i32
    %c0_i32_0 = arith.constant 0 : i32
    %c0_i32_1 = arith.constant 0 : i32
    return %c0_i32, %c0_i32_0 : i32, i32
  }
  func.func @transform_5(%arg0: i32) -> (i32, i32) {
    %c0_i32 = arith.constant 0 : i32
    %c0_i32_0 = arith.constant 0 : i32
    %c0_i32_1 = arith.constant 0 : i32
    return %c0_i32, %c0_i32_0 : i32, i32
  }
  func.func @transform_6(%arg0: i32) -> (i32, i32) {
    %c0_i32 = arith.constant 0 : i32
    %c0_i32_0 = arith.constant 0 : i32
    %c0_i32_1 = arith.constant 0 : i32
    return %c0_i32, %c0_i32_0 : i32, i32
  }
  func.func @transform_7(%arg0: i32) -> (i32, i32) {
    %c0_i32 = arith.constant 0 : i32
    %c0_i32_0 = arith.constant 0 : i32
    %c0_i32_1 = arith.constant 0 : i32
    return %c0_i32, %c0_i32_0 : i32, i32
  }
  func.func @transform_8(%arg0: i32) -> (i32, i32) {
    %c0_i32 = arith.constant 0 : i32
    %c0_i32_0 = arith.constant 0 : i32
    %c0_i32_1 = arith.constant 0 : i32
    return %c0_i32, %c0_i32_0 : i32, i32
  }
  func.func @transform_9(%arg0: i32) -> (i32, i32) {
    %c0_i32 = arith.constant 0 : i32
    %c0_i32_0 = arith.constant 0 : i32
    return %arg0, %c0_i32 : i32, i32
  }
  func.func @transform_10(%arg0: i32) -> (i32, i32) {
    %c0_i32 = arith.constant 0 : i32
    %c0_i32_0 = arith.constant 0 : i32
    return %arg0, %c0_i32 : i32, i32
  }
  func.func @transform_11(%arg0: i32) -> (i32, i32) {
    %c0_i32 = arith.constant 0 : i32
    %c0_i32_0 = arith.constant 0 : i32
    return %arg0, %c0_i32 : i32, i32
  }
}

module attributes {stable_mosaic.version = 11 : i64} {
  func.func @flash_attn_kernel(%arg0: i32, %arg1: i32, %arg2: i32, %arg3: memref<1x4x8x8xbf16, #tpu.memory_space<vmem>>, %arg4: memref<1x4x8x8xbf16, #tpu.memory_space<vmem>>, %arg5: memref<1x4x8x8xbf16, #tpu.memory_space<vmem>>, %arg6: memref<4x1x1xf32, #tpu.memory_space<vmem>>, %arg7: memref<1x4x8x8xbf16, #tpu.memory_space<vmem>>, %arg8: memref<4x8x1xf32, #tpu.memory_space<vmem>>, %arg9: memref<4x8x1xf32, #tpu.memory_space<vmem>>, %arg10: memref<4x8x8xf32, #tpu.memory_space<vmem>>) attributes {dimension_semantics = [#tpu.dimension_semantics<parallel>, #tpu.dimension_semantics<parallel>, #tpu.dimension_semantics<arbitrary>], iteration_bounds = array<i64: 2, 1, 1>, scalar_prefetch = 0 : i64, scratch_operands = 3 : i64, tpu.core_type = #tpu.core_type<tc>, window_params = [{transform_indices = @transform_0, window_bounds = array<i64: 1, 4, 8, 8>}, {transform_indices = @transform_1, window_bounds = array<i64: 1, 4, 8, 8>}, {transform_indices = @transform_2, window_bounds = array<i64: 1, 4, 8, 8>}, {pipeline_mode = #tpu.pipeline_mode<synchronous>, transform_indices = @transform_3, window_bounds = array<i64: 4, 1, 1>}, {transform_indices = @transform_4, window_bounds = array<i64: 1, 4, 8, 8>}]} {
    %c0_i32 = arith.constant 0 : i32
    %0 = arith.cmpi eq, %arg2, %c0_i32 : i32
    %1 = arith.extui %0 : i1 to i32
    %c0_i32_0 = arith.constant 0 : i32
    %2 = arith.cmpi ne, %1, %c0_i32_0 : i32
    scf.if %2 {
      %cst_41 = arith.constant 0xFF800000 : f32
      %56 = vector.broadcast %cst_41 : f32 to vector<4x8x1xf32>
      %c0_42 = arith.constant 0 : index
      %c0_43 = arith.constant 0 : index
      %c0_44 = arith.constant 0 : index
      %57 = vector.load %arg8[%c0_42, %c0_43, %c0_44] : memref<4x8x1xf32, #tpu.memory_space<vmem>>, vector<4x8x1xf32>
      tpu.vector_store %arg8[%c0_42, %c0_43, %c0_44], %56 {strides = array<i32>} : memref<4x8x1xf32, #tpu.memory_space<vmem>>, vector<4x8x1xf32>,
      %cst_45 = arith.constant 0.000000e+00 : f32
      %58 = vector.broadcast %cst_45 : f32 to vector<4x8x1xf32>
      %c0_46 = arith.constant 0 : index
      %c0_47 = arith.constant 0 : index
      %c0_48 = arith.constant 0 : index
      %59 = vector.load %arg9[%c0_46, %c0_47, %c0_48] : memref<4x8x1xf32, #tpu.memory_space<vmem>>, vector<4x8x1xf32>
      tpu.vector_store %arg9[%c0_46, %c0_47, %c0_48], %58 {strides = array<i32>} : memref<4x8x1xf32, #tpu.memory_space<vmem>>, vector<4x8x1xf32>,
      %cst_49 = arith.constant 0.000000e+00 : f32
      %60 = vector.broadcast %cst_49 : f32 to vector<4x8x8xf32>
      %c0_50 = arith.constant 0 : index
      %c0_51 = arith.constant 0 : index
      %c0_52 = arith.constant 0 : index
      %61 = vector.load %arg10[%c0_50, %c0_51, %c0_52] : memref<4x8x8xf32, #tpu.memory_space<vmem>>, vector<4x8x8xf32>
      tpu.vector_store %arg10[%c0_50, %c0_51, %c0_52], %60 {strides = array<i32>} : memref<4x8x8xf32, #tpu.memory_space<vmem>>, vector<4x8x8xf32>,
    } else {
    }
    %c0 = arith.constant 0 : index
    %c0_1 = arith.constant 0 : index
    %c0_2 = arith.constant 0 : index
    %c0_3 = arith.constant 0 : index
    %3 = vector.load %arg3[%c0, %c0_1, %c0_2, %c0_3] : memref<1x4x8x8xbf16, #tpu.memory_space<vmem>>, vector<1x4x8x8xbf16>
    %4 = vector.shape_cast %3 : vector<1x4x8x8xbf16> to vector<4x8x8xbf16>
    %c0_4 = arith.constant 0 : index
    %c0_5 = arith.constant 0 : index
    %c0_6 = arith.constant 0 : index
    %c0_7 = arith.constant 0 : index
    %5 = vector.load %arg4[%c0_4, %c0_5, %c0_6, %c0_7] : memref<1x4x8x8xbf16, #tpu.memory_space<vmem>>, vector<1x4x8x8xbf16>
    %6 = vector.shape_cast %5 : vector<1x4x8x8xbf16> to vector<4x8x8xbf16>
    %c0_8 = arith.constant 0 : index
    %c0_9 = arith.constant 0 : index
    %c0_10 = arith.constant 0 : index
    %c0_11 = arith.constant 0 : index
    %7 = vector.load %arg5[%c0_8, %c0_9, %c0_10, %c0_11] : memref<1x4x8x8xbf16, #tpu.memory_space<vmem>>, vector<1x4x8x8xbf16>
    %8 = vector.shape_cast %7 : vector<1x4x8x8xbf16> to vector<4x8x8xbf16>
    "tpu.trace_start"() <{level = 10 : i32, message = "hqd,hkd->hqk"}> : () -> ()
    %cst = arith.constant dense<0.000000e+00> : vector<4x8x8xf32>
    %9 = tpu.matmul %4, %6, %cst {dimension_numbers = #tpu.dot_dimension_numbers<[2], [2], [1], [1], [0, 0, 0, 1, 1, 1], [0], [0]>} : vector<4x8x8xbf16>, vector<4x8x8xbf16>, vector<4x8x8xf32> -> vector<4x8x8xf32>
    "tpu.trace_stop"() : () -> ()
    %cst_12 = arith.constant 0.353553385 : f32
    %10 = vector.broadcast %cst_12 : f32 to vector<4x8x8xf32>
    %11 = arith.mulf %9, %10 : vector<4x8x8xf32>
    %c8_i32 = arith.constant 8 : i32
    %12 = arith.muli %arg1, %c8_i32 : i32
    %13 = tpu.iota {dimensions = array<i32: 0>} : vector<8x8xi32>
    %14 = vector.broadcast %12 : i32 to vector<8x8xi32>
    %15 = arith.addi %14, %13 : vector<8x8xi32>
    %c8_i32_13 = arith.constant 8 : i32
    %16 = arith.muli %arg2, %c8_i32_13 : i32
    %17 = tpu.iota {dimensions = array<i32: 1>} : vector<8x8xi32>
    %18 = vector.broadcast %16 : i32 to vector<8x8xi32>
    %19 = arith.addi %18, %17 : vector<8x8xi32>
    %20 = arith.subi %19, %15 : vector<8x8xi32>
    %c0_i32_14 = arith.constant 0 : i32
    %21 = vector.broadcast %c0_i32_14 : i32 to vector<8x8xi32>
    %22 = arith.minsi %20, %21 : vector<8x8xi32>
    %23 = arith.sitofp %22 : vector<8x8xi32> to vector<8x8xf32>
    %c0_15 = arith.constant 0 : index
    %c0_16 = arith.constant 0 : index
    %c0_17 = arith.constant 0 : index
    %24 = vector.load %arg6[%c0_15, %c0_16, %c0_17] : memref<4x1x1xf32, #tpu.memory_space<vmem>>, vector<4x1x1xf32>
    %25 = vector.shape_cast %23 : vector<8x8xf32> to vector<1x8x8xf32>
    %26 = vector.broadcast %24 : vector<4x1x1xf32> to vector<4x8x8xf32>
    %27 = vector.broadcast %25 : vector<1x8x8xf32> to vector<4x8x8xf32>
    %28 = arith.mulf %26, %27 : vector<4x8x8xf32>
    %29 = arith.addf %11, %28 : vector<4x8x8xf32>
    %c0_18 = arith.constant 0 : index
    %c0_19 = arith.constant 0 : index
    %c0_20 = arith.constant 0 : index
    %30 = vector.load %arg8[%c0_18, %c0_19, %c0_20] : memref<4x8x1xf32, #tpu.memory_space<vmem>>, vector<4x8x1xf32>
    %cst_21 = arith.constant dense<0xFF800000> : vector<4x8xf32>
    %31 = vector.multi_reduction <maximumf>, %29, %cst_21 [2] : vector<4x8x8xf32> to vector<4x8xf32>
    %32 = vector.shape_cast %31 : vector<4x8xf32> to vector<4x8x1xf32>
    %33 = arith.maximumf %30, %32 : vector<4x8x1xf32>
    %34 = arith.subf %30, %33 : vector<4x8x1xf32>
    %35 = math.exp %34 : vector<4x8x1xf32>
    %36 = vector.broadcast %33 : vector<4x8x1xf32> to vector<4x8x8xf32>
    %37 = arith.subf %29, %36 : vector<4x8x8xf32>
    %38 = math.exp %37 : vector<4x8x8xf32>
    %c0_22 = arith.constant 0 : index
    %c0_23 = arith.constant 0 : index
    %c0_24 = arith.constant 0 : index
    %39 = vector.load %arg9[%c0_22, %c0_23, %c0_24] : memref<4x8x1xf32, #tpu.memory_space<vmem>>, vector<4x8x1xf32>
    %40 = arith.mulf %35, %39 : vector<4x8x1xf32>
    %cst_25 = arith.constant dense<0.000000e+00> : vector<4x8xf32>
    %41 = vector.multi_reduction <add>, %38, %cst_25 [2] : vector<4x8x8xf32> to vector<4x8xf32>
    %42 = vector.shape_cast %41 : vector<4x8xf32> to vector<4x8x1xf32>
    %43 = arith.addf %40, %42 : vector<4x8x1xf32>
    %c0_26 = arith.constant 0 : index
    %c0_27 = arith.constant 0 : index
    %c0_28 = arith.constant 0 : index
    %44 = vector.load %arg9[%c0_26, %c0_27, %c0_28] : memref<4x8x1xf32, #tpu.memory_space<vmem>>, vector<4x8x1xf32>
    tpu.vector_store %arg9[%c0_26, %c0_27, %c0_28], %43 {strides = array<i32>} : memref<4x8x1xf32, #tpu.memory_space<vmem>>, vector<4x8x1xf32>,
    %c0_29 = arith.constant 0 : index
    %c0_30 = arith.constant 0 : index
    %c0_31 = arith.constant 0 : index
    %45 = vector.load %arg10[%c0_29, %c0_30, %c0_31] : memref<4x8x8xf32, #tpu.memory_space<vmem>>, vector<4x8x8xf32>
    %46 = vector.broadcast %35 : vector<4x8x1xf32> to vector<4x8x8xf32>
    %47 = arith.mulf %46, %45 : vector<4x8x8xf32>
    %48 = arith.truncf %38 : vector<4x8x8xf32> to vector<4x8x8xbf16>
    "tpu.trace_start"() <{level = 10 : i32, message = "hqk,hkd->hqd"}> : () -> ()
    %cst_32 = arith.constant dense<0.000000e+00> : vector<4x8x8xf32>
    %49 = tpu.matmul %48, %8, %cst_32 {dimension_numbers = #tpu.dot_dimension_numbers<[2], [1], [1], [2], [0, 0, 0, 1, 1, 2], [0], [0]>} : vector<4x8x8xbf16>, vector<4x8x8xbf16>, vector<4x8x8xf32> -> vector<4x8x8xf32>
    "tpu.trace_stop"() : () -> ()
    %50 = arith.addf %47, %49 : vector<4x8x8xf32>
    %c0_33 = arith.constant 0 : index
    %c0_34 = arith.constant 0 : index
    %c0_35 = arith.constant 0 : index
    %51 = vector.load %arg10[%c0_33, %c0_34, %c0_35] : memref<4x8x8xf32, #tpu.memory_space<vmem>>, vector<4x8x8xf32>
    tpu.vector_store %arg10[%c0_33, %c0_34, %c0_35], %50 {strides = array<i32>} : memref<4x8x8xf32, #tpu.memory_space<vmem>>, vector<4x8x8xf32>,
    %c0_36 = arith.constant 0 : index
    %c0_37 = arith.constant 0 : index
    %c0_38 = arith.constant 0 : index
    %52 = vector.load %arg8[%c0_36, %c0_37, %c0_38] : memref<4x8x1xf32, #tpu.memory_space<vmem>>, vector<4x8x1xf32>
    tpu.vector_store %arg8[%c0_36, %c0_37, %c0_38], %33 {strides = array<i32>} : memref<4x8x1xf32, #tpu.memory_space<vmem>>, vector<4x8x1xf32>,
    %c0_i32_39 = arith.constant 0 : i32
    %53 = arith.cmpi eq, %arg2, %c0_i32_39 : i32
    %54 = arith.extui %53 : i1 to i32
    %c0_i32_40 = arith.constant 0 : i32
    %55 = arith.cmpi ne, %54, %c0_i32_40 : i32
    scf.if %55 {
      %c0_41 = arith.constant 0 : index
      %c0_42 = arith.constant 0 : index
      %c0_43 = arith.constant 0 : index
      %56 = vector.load %arg10[%c0_41, %c0_42, %c0_43] : memref<4x8x8xf32, #tpu.memory_space<vmem>>, vector<4x8x8xf32>
      %c0_44 = arith.constant 0 : index
      %c0_45 = arith.constant 0 : index
      %c0_46 = arith.constant 0 : index
      %57 = vector.load %arg9[%c0_44, %c0_45, %c0_46] : memref<4x8x1xf32, #tpu.memory_space<vmem>>, vector<4x8x1xf32>
      %58 = tpu.reciprocal %57 {approx = true} : vector<4x8x1xf32> -> vector<4x8x1xf32>
      %59 = vector.broadcast %58 : vector<4x8x1xf32> to vector<4x8x8xf32>
      %60 = arith.mulf %56, %59 : vector<4x8x8xf32>
      %61 = arith.truncf %60 : vector<4x8x8xf32> to vector<4x8x8xbf16>
      %c0_47 = arith.constant 0 : index
      %c0_48 = arith.constant 0 : index
      %c0_49 = arith.constant 0 : index
      %c0_50 = arith.constant 0 : index
      %62 = vector.load %arg7[%c0_47, %c0_48, %c0_49, %c0_50] : memref<1x4x8x8xbf16, #tpu.memory_space<vmem>>, vector<1x4x8x8xbf16>
      %63 = vector.shape_cast %62 : vector<1x4x8x8xbf16> to vector<4x8x8xbf16>
      %64 = vector.shape_cast %61 : vector<4x8x8xbf16> to vector<1x4x8x8xbf16>
      tpu.vector_store %arg7[%c0_47, %c0_48, %c0_49, %c0_50], %64 {strides = array<i32>} : memref<1x4x8x8xbf16, #tpu.memory_space<vmem>>, vector<1x4x8x8xbf16>,
    } else {
    }
    return
  }
  func.func @transform_0(%arg0: i32, %arg1: i32, %arg2: i32) -> (i32, i32, i32, i32) {
    %c0_i32 = arith.constant 0 : i32
    %c0_i32_0 = arith.constant 0 : i32
    %c0_i32_1 = arith.constant 0 : i32
    return %arg0, %c0_i32, %arg1, %c0_i32_0 : i32, i32, i32, i32
  }
  func.func @transform_1(%arg0: i32, %arg1: i32, %arg2: i32) -> (i32, i32, i32, i32) {
    %c0_i32 = arith.constant 0 : i32
    %c0_i32_0 = arith.constant 0 : i32
    %c0_i32_1 = arith.constant 0 : i32
    return %arg0, %c0_i32, %arg2, %c0_i32_0 : i32, i32, i32, i32
  }
  func.func @transform_2(%arg0: i32, %arg1: i32, %arg2: i32) -> (i32, i32, i32, i32) {
    %c0_i32 = arith.constant 0 : i32
    %c0_i32_0 = arith.constant 0 : i32
    %c0_i32_1 = arith.constant 0 : i32
    return %arg0, %c0_i32, %arg2, %c0_i32_0 : i32, i32, i32, i32
  }
  func.func @transform_3(%arg0: i32, %arg1: i32, %arg2: i32) -> (i32, i32, i32) {
    %c0_i32 = arith.constant 0 : i32
    %c0_i32_0 = arith.constant 0 : i32
    %c0_i32_1 = arith.constant 0 : i32
    %c0_i32_2 = arith.constant 0 : i32
    return %c0_i32, %c0_i32_0, %c0_i32_1 : i32, i32, i32
  }
  func.func @transform_4(%arg0: i32, %arg1: i32, %arg2: i32) -> (i32, i32, i32, i32) {
    %c0_i32 = arith.constant 0 : i32
    %c0_i32_0 = arith.constant 0 : i32
    %c0_i32_1 = arith.constant 0 : i32
    return %arg0, %c0_i32, %arg1, %c0_i32_0 : i32, i32, i32, i32
  }
}

module attributes {stable_mosaic.version = 11 : i64} {
  func.func @proj_ffn_kernel(%arg0: i32, %arg1: memref<16x32xf32, #tpu.memory_space<vmem>>, %arg2: memref<16x32xbf16, #tpu.memory_space<vmem>>, %arg3: memref<32x32xbf16, #tpu.memory_space<vmem>>, %arg4: memref<1x32xf32, #tpu.memory_space<vmem>>, %arg5: memref<1x32xf32, #tpu.memory_space<vmem>>, %arg6: memref<1x32xf32, #tpu.memory_space<vmem>>, %arg7: memref<32x64xbf16, #tpu.memory_space<vmem>>, %arg8: memref<1x64xf32, #tpu.memory_space<vmem>>, %arg9: memref<64x32xbf16, #tpu.memory_space<vmem>>, %arg10: memref<1x32xf32, #tpu.memory_space<vmem>>, %arg11: memref<16x32xf32, #tpu.memory_space<vmem>>) attributes {dimension_semantics = [#tpu.dimension_semantics<parallel>], iteration_bounds = array<i64: 1>, scalar_prefetch = 0 : i64, scratch_operands = 0 : i64, tpu.core_type = #tpu.core_type<tc>, window_params = [{transform_indices = @transform_0, window_bounds = array<i64: 16, 32>}, {transform_indices = @transform_1, window_bounds = array<i64: 16, 32>}, {pipeline_mode = #tpu.pipeline_mode<synchronous>, transform_indices = @transform_2, window_bounds = array<i64: 32, 32>}, {pipeline_mode = #tpu.pipeline_mode<synchronous>, transform_indices = @transform_3, window_bounds = array<i64: 1, 32>}, {pipeline_mode = #tpu.pipeline_mode<synchronous>, transform_indices = @transform_4, window_bounds = array<i64: 1, 32>}, {pipeline_mode = #tpu.pipeline_mode<synchronous>, transform_indices = @transform_5, window_bounds = array<i64: 1, 32>}, {pipeline_mode = #tpu.pipeline_mode<synchronous>, transform_indices = @transform_6, window_bounds = array<i64: 32, 64>}, {pipeline_mode = #tpu.pipeline_mode<synchronous>, transform_indices = @transform_7, window_bounds = array<i64: 1, 64>}, {pipeline_mode = #tpu.pipeline_mode<synchronous>, transform_indices = @transform_8, window_bounds = array<i64: 64, 32>}, {pipeline_mode = #tpu.pipeline_mode<synchronous>, transform_indices = @transform_9, window_bounds = array<i64: 1, 32>}, {transform_indices = @transform_10, window_bounds = array<i64: 16, 32>}]} {
    %c0 = arith.constant 0 : index
    %c0_0 = arith.constant 0 : index
    %0 = vector.load %arg1[%c0, %c0_0] : memref<16x32xf32, #tpu.memory_space<vmem>>, vector<16x32xf32>
    %c0_1 = arith.constant 0 : index
    %c0_2 = arith.constant 0 : index
    %1 = vector.load %arg2[%c0_1, %c0_2] : memref<16x32xbf16, #tpu.memory_space<vmem>>, vector<16x32xbf16>
    %c0_3 = arith.constant 0 : index
    %c0_4 = arith.constant 0 : index
    %2 = vector.load %arg3[%c0_3, %c0_4] : memref<32x32xbf16, #tpu.memory_space<vmem>>, vector<32x32xbf16>
    %cst = arith.constant dense<0.000000e+00> : vector<16x32xf32>
    %3 = tpu.matmul %1, %2, %cst {dimension_numbers = #tpu.dot_dimension_numbers<[1], [0], [0], [1], [0, 0, 1, 1], [], []>} : vector<16x32xbf16>, vector<32x32xbf16>, vector<16x32xf32> -> vector<16x32xf32>
    %4 = arith.addf %0, %3 : vector<16x32xf32>
    %c0_5 = arith.constant 0 : index
    %c0_6 = arith.constant 0 : index
    %5 = vector.load %arg4[%c0_5, %c0_6] : memref<1x32xf32, #tpu.memory_space<vmem>>, vector<1x32xf32>
    %6 = vector.broadcast %5 : vector<1x32xf32> to vector<16x32xf32>
    %7 = arith.addf %4, %6 : vector<16x32xf32>
    %c0_7 = arith.constant 0 : index
    %c0_8 = arith.constant 0 : index
    %8 = vector.load %arg5[%c0_7, %c0_8] : memref<1x32xf32, #tpu.memory_space<vmem>>, vector<1x32xf32>
    %c0_9 = arith.constant 0 : index
    %c0_10 = arith.constant 0 : index
    %9 = vector.load %arg6[%c0_9, %c0_10] : memref<1x32xf32, #tpu.memory_space<vmem>>, vector<1x32xf32>
    %cst_11 = arith.constant dense<0.000000e+00> : vector<16xf32>
    %10 = vector.multi_reduction <add>, %7, %cst_11 [1] : vector<16x32xf32> to vector<16xf32>
    %11 = vector.shape_cast %10 : vector<16xf32> to vector<16x1xf32>
    %cst_12 = arith.constant 3.200000e+01 : f32
    %12 = vector.broadcast %cst_12 : f32 to vector<16x1xf32>
    %13 = arith.divf %11, %12 : vector<16x1xf32>
    %14 = vector.broadcast %13 : vector<16x1xf32> to vector<16x32xf32>
    %15 = arith.subf %7, %14 : vector<16x32xf32>
    %16 = arith.mulf %15, %15 : vector<16x32xf32>
    %cst_13 = arith.constant dense<0.000000e+00> : vector<16xf32>
    %17 = vector.multi_reduction <add>, %16, %cst_13 [1] : vector<16x32xf32> to vector<16xf32>
    %18 = vector.shape_cast %17 : vector<16xf32> to vector<16x1xf32>
    %cst_14 = arith.constant 3.200000e+01 : f32
    %19 = vector.broadcast %cst_14 : f32 to vector<16x1xf32>
    %20 = arith.divf %18, %19 : vector<16x1xf32>
    %21 = vector.broadcast %13 : vector<16x1xf32> to vector<16x32xf32>
    %22 = arith.subf %7, %21 : vector<16x32xf32>
    %cst_15 = arith.constant 9.99999974E-6 : f32
    %23 = vector.broadcast %cst_15 : f32 to vector<16x1xf32>
    %24 = arith.addf %20, %23 : vector<16x1xf32>
    %25 = math.rsqrt %24 : vector<16x1xf32>
    %26 = vector.broadcast %25 : vector<16x1xf32> to vector<16x32xf32>
    %27 = arith.mulf %22, %26 : vector<16x32xf32>
    %28 = vector.broadcast %8 : vector<1x32xf32> to vector<16x32xf32>
    %29 = arith.mulf %27, %28 : vector<16x32xf32>
    %30 = vector.broadcast %9 : vector<1x32xf32> to vector<16x32xf32>
    %31 = arith.addf %29, %30 : vector<16x32xf32>
    %32 = arith.truncf %31 : vector<16x32xf32> to vector<16x32xbf16>
    %c0_16 = arith.constant 0 : index
    %c0_17 = arith.constant 0 : index
    %33 = vector.load %arg7[%c0_16, %c0_17] : memref<32x64xbf16, #tpu.memory_space<vmem>>, vector<32x64xbf16>
    %cst_18 = arith.constant dense<0.000000e+00> : vector<16x64xf32>
    %34 = tpu.matmul %32, %33, %cst_18 {dimension_numbers = #tpu.dot_dimension_numbers<[1], [0], [0], [1], [0, 0, 1, 1], [], []>} : vector<16x32xbf16>, vector<32x64xbf16>, vector<16x64xf32> -> vector<16x64xf32>
    %c0_19 = arith.constant 0 : index
    %c0_20 = arith.constant 0 : index
    %35 = vector.load %arg8[%c0_19, %c0_20] : memref<1x64xf32, #tpu.memory_space<vmem>>, vector<1x64xf32>
    %36 = vector.broadcast %35 : vector<1x64xf32> to vector<16x64xf32>
    %37 = arith.addf %34, %36 : vector<16x64xf32>
    %cst_21 = arith.constant 5.000000e-01 : f32
    %38 = vector.broadcast %cst_21 : f32 to vector<16x64xf32>
    %39 = arith.mulf %38, %37 : vector<16x64xf32>
    %cst_22 = arith.constant 0.707106769 : f32
    %40 = vector.broadcast %cst_22 : f32 to vector<16x64xf32>
    %41 = arith.mulf %37, %40 : vector<16x64xf32>
    %42 = math.erf %41 : vector<16x64xf32>
    %cst_23 = arith.constant 1.000000e+00 : f32
    %43 = vector.broadcast %cst_23 : f32 to vector<16x64xf32>
    %44 = arith.addf %43, %42 : vector<16x64xf32>
    %45 = arith.mulf %39, %44 : vector<16x64xf32>
    %46 = arith.truncf %45 : vector<16x64xf32> to vector<16x64xbf16>
    %c0_24 = arith.constant 0 : index
    %c0_25 = arith.constant 0 : index
    %47 = vector.load %arg9[%c0_24, %c0_25] : memref<64x32xbf16, #tpu.memory_space<vmem>>, vector<64x32xbf16>
    %cst_26 = arith.constant dense<0.000000e+00> : vector<16x32xf32>
    %48 = tpu.matmul %46, %47, %cst_26 {dimension_numbers = #tpu.dot_dimension_numbers<[1], [0], [0], [1], [0, 0, 1, 1], [], []>} : vector<16x64xbf16>, vector<64x32xbf16>, vector<16x32xf32> -> vector<16x32xf32>
    %c0_27 = arith.constant 0 : index
    %c0_28 = arith.constant 0 : index
    %49 = vector.load %arg10[%c0_27, %c0_28] : memref<1x32xf32, #tpu.memory_space<vmem>>, vector<1x32xf32>
    %50 = vector.broadcast %49 : vector<1x32xf32> to vector<16x32xf32>
    %51 = arith.addf %48, %50 : vector<16x32xf32>
    %52 = arith.addf %7, %51 : vector<16x32xf32>
    %c0_29 = arith.constant 0 : index
    %c0_30 = arith.constant 0 : index
    %53 = vector.load %arg11[%c0_29, %c0_30] : memref<16x32xf32, #tpu.memory_space<vmem>>, vector<16x32xf32>
    tpu.vector_store %arg11[%c0_29, %c0_30], %52 {strides = array<i32>} : memref<16x32xf32, #tpu.memory_space<vmem>>, vector<16x32xf32>,
    return
  }
  func.func @transform_0(%arg0: i32) -> (i32, i32) {
    %c0_i32 = arith.constant 0 : i32
    %c0_i32_0 = arith.constant 0 : i32
    return %arg0, %c0_i32 : i32, i32
  }
  func.func @transform_1(%arg0: i32) -> (i32, i32) {
    %c0_i32 = arith.constant 0 : i32
    %c0_i32_0 = arith.constant 0 : i32
    return %arg0, %c0_i32 : i32, i32
  }
  func.func @transform_2(%arg0: i32) -> (i32, i32) {
    %c0_i32 = arith.constant 0 : i32
    %c0_i32_0 = arith.constant 0 : i32
    %c0_i32_1 = arith.constant 0 : i32
    return %c0_i32, %c0_i32_0 : i32, i32
  }
  func.func @transform_3(%arg0: i32) -> (i32, i32) {
    %c0_i32 = arith.constant 0 : i32
    %c0_i32_0 = arith.constant 0 : i32
    %c0_i32_1 = arith.constant 0 : i32
    return %c0_i32, %c0_i32_0 : i32, i32
  }
  func.func @transform_4(%arg0: i32) -> (i32, i32) {
    %c0_i32 = arith.constant 0 : i32
    %c0_i32_0 = arith.constant 0 : i32
    %c0_i32_1 = arith.constant 0 : i32
    return %c0_i32, %c0_i32_0 : i32, i32
  }
  func.func @transform_5(%arg0: i32) -> (i32, i32) {
    %c0_i32 = arith.constant 0 : i32
    %c0_i32_0 = arith.constant 0 : i32
    %c0_i32_1 = arith.constant 0 : i32
    return %c0_i32, %c0_i32_0 : i32, i32
  }
  func.func @transform_6(%arg0: i32) -> (i32, i32) {
    %c0_i32 = arith.constant 0 : i32
    %c0_i32_0 = arith.constant 0 : i32
    %c0_i32_1 = arith.constant 0 : i32
    return %c0_i32, %c0_i32_0 : i32, i32
  }
  func.func @transform_7(%arg0: i32) -> (i32, i32) {
    %c0_i32 = arith.constant 0 : i32
    %c0_i32_0 = arith.constant 0 : i32
    %c0_i32_1 = arith.constant 0 : i32
    return %c0_i32, %c0_i32_0 : i32, i32
  }
  func.func @transform_8(%arg0: i32) -> (i32, i32) {
    %c0_i32 = arith.constant 0 : i32
    %c0_i32_0 = arith.constant 0 : i32
    %c0_i32_1 = arith.constant 0 : i32
    return %c0_i32, %c0_i32_0 : i32, i32
  }
  func.func @transform_9(%arg0: i32) -> (i32, i32) {
    %c0_i32 = arith.constant 0 : i32
    %c0_i32_0 = arith.constant 0 : i32
    %c0_i32_1 = arith.constant 0 : i32
    return %c0_i32, %c0_i32_0 : i32, i32
  }
  func.func @transform_10(%arg0: i32) -> (i32, i32) {
    %c0_i32 = arith.constant 0 : i32
    %c0_i32_0 = arith.constant 0 : i32
    return %arg0, %c0_i32 : i32, i32
  }
}

module attributes {stable_mosaic.version = 11 : i64} {
  func.func @lm_head_kernel(%arg0: i32, %arg1: memref<2x32xf32, #tpu.memory_space<vmem>>, %arg2: memref<1x32xf32, #tpu.memory_space<vmem>>, %arg3: memref<1x32xf32, #tpu.memory_space<vmem>>, %arg4: memref<64x32xbf16, #tpu.memory_space<vmem>>, %arg5: memref<2x64xf32, #tpu.memory_space<vmem>>) attributes {dimension_semantics = [#tpu.dimension_semantics<parallel>], iteration_bounds = array<i64: 1>, scalar_prefetch = 0 : i64, scratch_operands = 0 : i64, tpu.core_type = #tpu.core_type<tc>, window_params = [{pipeline_mode = #tpu.pipeline_mode<synchronous>, transform_indices = @transform_0, window_bounds = array<i64: 2, 32>}, {pipeline_mode = #tpu.pipeline_mode<synchronous>, transform_indices = @transform_1, window_bounds = array<i64: 1, 32>}, {pipeline_mode = #tpu.pipeline_mode<synchronous>, transform_indices = @transform_2, window_bounds = array<i64: 1, 32>}, {transform_indices = @transform_3, window_bounds = array<i64: 64, 32>}, {transform_indices = @transform_4, window_bounds = array<i64: 2, 64>}]} {
    %c0 = arith.constant 0 : index
    %c0_0 = arith.constant 0 : index
    %0 = vector.load %arg1[%c0, %c0_0] : memref<2x32xf32, #tpu.memory_space<vmem>>, vector<2x32xf32>
    %c0_1 = arith.constant 0 : index
    %c0_2 = arith.constant 0 : index
    %1 = vector.load %arg2[%c0_1, %c0_2] : memref<1x32xf32, #tpu.memory_space<vmem>>, vector<1x32xf32>
    %c0_3 = arith.constant 0 : index
    %c0_4 = arith.constant 0 : index
    %2 = vector.load %arg3[%c0_3, %c0_4] : memref<1x32xf32, #tpu.memory_space<vmem>>, vector<1x32xf32>
    %cst = arith.constant dense<0.000000e+00> : vector<2xf32>
    %3 = vector.multi_reduction <add>, %0, %cst [1] : vector<2x32xf32> to vector<2xf32>
    %4 = vector.shape_cast %3 : vector<2xf32> to vector<2x1xf32>
    %cst_5 = arith.constant 3.200000e+01 : f32
    %5 = vector.broadcast %cst_5 : f32 to vector<2x1xf32>
    %6 = arith.divf %4, %5 : vector<2x1xf32>
    %7 = vector.broadcast %6 : vector<2x1xf32> to vector<2x32xf32>
    %8 = arith.subf %0, %7 : vector<2x32xf32>
    %9 = arith.mulf %8, %8 : vector<2x32xf32>
    %cst_6 = arith.constant dense<0.000000e+00> : vector<2xf32>
    %10 = vector.multi_reduction <add>, %9, %cst_6 [1] : vector<2x32xf32> to vector<2xf32>
    %11 = vector.shape_cast %10 : vector<2xf32> to vector<2x1xf32>
    %cst_7 = arith.constant 3.200000e+01 : f32
    %12 = vector.broadcast %cst_7 : f32 to vector<2x1xf32>
    %13 = arith.divf %11, %12 : vector<2x1xf32>
    %14 = vector.broadcast %6 : vector<2x1xf32> to vector<2x32xf32>
    %15 = arith.subf %0, %14 : vector<2x32xf32>
    %cst_8 = arith.constant 9.99999974E-6 : f32
    %16 = vector.broadcast %cst_8 : f32 to vector<2x1xf32>
    %17 = arith.addf %13, %16 : vector<2x1xf32>
    %18 = math.rsqrt %17 : vector<2x1xf32>
    %19 = vector.broadcast %18 : vector<2x1xf32> to vector<2x32xf32>
    %20 = arith.mulf %15, %19 : vector<2x32xf32>
    %21 = vector.broadcast %1 : vector<1x32xf32> to vector<2x32xf32>
    %22 = arith.mulf %20, %21 : vector<2x32xf32>
    %23 = vector.broadcast %2 : vector<1x32xf32> to vector<2x32xf32>
    %24 = arith.addf %22, %23 : vector<2x32xf32>
    %25 = arith.truncf %24 : vector<2x32xf32> to vector<2x32xbf16>
    %c0_9 = arith.constant 0 : index
    %c0_10 = arith.constant 0 : index
    %26 = vector.load %arg4[%c0_9, %c0_10] : memref<64x32xbf16, #tpu.memory_space<vmem>>, vector<64x32xbf16>
    %cst_11 = arith.constant dense<0.000000e+00> : vector<2x64xf32>
    %27 = tpu.matmul %25, %26, %cst_11 {dimension_numbers = #tpu.dot_dimension_numbers<[1], [1], [0], [0], [0, 0, 1, 0], [], []>} : vector<2x32xbf16>, vector<64x32xbf16>, vector<2x64xf32> -> vector<2x64xf32>
    %c0_12 = arith.constant 0 : index
    %c0_13 = arith.constant 0 : index
    %28 = vector.load %arg5[%c0_12, %c0_13] : memref<2x64xf32, #tpu.memory_space<vmem>>, vector<2x64xf32>
    tpu.vector_store %arg5[%c0_12, %c0_13], %27 {strides = array<i32>} : memref<2x64xf32, #tpu.memory_space<vmem>>, vector<2x64xf32>,
    return
  }
  func.func @transform_0(%arg0: i32) -> (i32, i32) {
    %c0_i32 = arith.constant 0 : i32
    %c0_i32_0 = arith.constant 0 : i32
    %c0_i32_1 = arith.constant 0 : i32
    return %c0_i32, %c0_i32_0 : i32, i32
  }
  func.func @transform_1(%arg0: i32) -> (i32, i32) {
    %c0_i32 = arith.constant 0 : i32
    %c0_i32_0 = arith.constant 0 : i32
    %c0_i32_1 = arith.constant 0 : i32
    return %c0_i32, %c0_i32_0 : i32, i32
  }
  func.func @transform_2(%arg0: i32) -> (i32, i32) {
    %c0_i32 = arith.constant 0 : i32
    %c0_i32_0 = arith.constant 0 : i32
    %c0_i32_1 = arith.constant 0 : i32
    return %c0_i32, %c0_i32_0 : i32, i32
  }
  func.func @transform_3(%arg0: i32) -> (i32, i32) {
    %c0_i32 = arith.constant 0 : i32
    %c0_i32_0 = arith.constant 0 : i32
    return %arg0, %c0_i32 : i32, i32
  }
  func.func @transform_4(%arg0: i32) -> (i32, i32) {
    %c0_i32 = arith.constant 0 : i32
    %c0_i32_0 = arith.constant 0 : i32
    return %c0_i32, %arg0 : i32, i32
  }
}

</mosaic_0001>

<bundles_post_ra>
// kernel: gpt2_alibi_forward.7
= control target key start
LH: loop header
LB: loop body
LE: loop exit
PB: predicated region body
PF: predicated region fallthrough
CT: control target
= control target key end

     0   :  { %vm40_vm0 = vcmask 261120   ;;  %v278_v4 = vmov 32.0   ;;  %vm210_vm8 = vcmask 257024   ;;  %s409_s0 = inlined_call_operand.vmem [shape: f32[16,32], index: 0, kind: input, shape index: {}]   ;;  %s410_s1 = inlined_call_operand.vmem [shape: f32[1,32], index: 1, kind: input, shape index: {}]   ;;  %s411_s2 = inlined_call_operand.vmem [shape: f32[1,32], index: 2, kind: input, shape index: {}]   ;;  %s412_s6 = inlined_call_operand.vmem [shape: f32[1,32], index: 6, kind: input, shape index: {}]   ;;  %s413_s3 = inlined_call_operand.vmem [shape: bf16[32,32], index: 3, kind: input, shape index: {}]   ;;  %s414_s4 = inlined_call_operand.vmem [shape: bf16[32,32], index: 4, kind: input, shape index: {}]   ;;  %s415_s5 = inlined_call_operand.vmem [shape: bf16[32,32], index: 5, kind: input, shape index: {}]   ;;  %s416_s7 = inlined_call_operand.vmem [shape: f32[1,32], index: 7, kind: input, shape index: {}]   ;;  %s417_s8 = inlined_call_operand.vmem [shape: f32[1,32], index: 8, kind: input, shape index: {}]   ;;  %s418_s9 = inlined_call_operand.vmem [shape: bf16[16,32], index: 9, kind: output, shape index: {0}]   ;;  %s419_s10 = inlined_call_operand.vmem [shape: bf16[16,32], index: 10, kind: output, shape index: {1}]   ;;  %s420_s11 = inlined_call_operand.vmem [shape: bf16[16,32], index: 11, kind: output, shape index: {2}]  }
   0x1   :  { %v36_v0 = vld [vmem:[%s409_s0] sm:$0xff]  ;;  %v37_v2 = vld [vmem:[%s409_s0 + $0x8] sm:$0xff]  ;;  %272 = vrcp.f32 %v278_v4 }
   0x2   :  { %v41_v1 = vsel %vm40_vm0, %v36_v0, 0.0  ;;  %v44_v3 = vsel %vm40_vm0, %v37_v2, 0.0  ;;  %v261_v21 = vld [vmem:[%s413_s3 + $0x8] sm:$0xff]  ;;  %v260_v25 = vld [vmem:[%s413_s3] sm:$0xff] }
   0x3   :  { %42 = vadd.xlane.f32.xlu0 %v41_v1  ;;  %v263_v22 = vld [vmem:[%s414_s4 + $0x8] sm:$0xff]  ;;  %132 = vmatpush.bf16.msra.mxu0 %v261_v21  ;;  %v262_v26 = vld [vmem:[%s414_s4] sm:$0xff] }
   0x4   :  { %v265_v23 = vld [vmem:[%s415_s5 + $0x8] sm:$0xff]  ;;  %166 = vmatpush.bf16.msra.mxu1 %v263_v22  ;;  %v264_v28 = vld [vmem:[%s415_s5] sm:$0xff] }
   0x5   :  { %200 = vmatpush.bf16.msra.mxu2 %v265_v23  ;;  %v267_v46 = vld [vmem:[%s410_s1] ss:$0 sm:$0xff] }
   0x6   :  { %v268_v51 = vld [vmem:[%s411_s2] ss:$0 sm:$0xff] }
   0x7   :  { %v273_v5 = vpop.eup %272  ;;  %133 = vmatpush.bf16.msra.mxu0 %v260_v25  ;;  %v269_v56 = vld [vmem:[%s412_s6] ss:$0 sm:$0xff] }
   0x8   :  { %v48_v6 = vmul.f32 32.0, %v273_v5  ;;  %vm52_vm1 = vweird.f32 %v273_v5  ;;  %167 = vmatpush.bf16.msra.mxu1 %v262_v26  ;;  %v270_v57 = vld [vmem:[%s416_s7] ss:$0 sm:$0xff] }
   0x9   :  { %201 = vmatpush.bf16.msra.mxu2 %v264_v28 }
   0xa   :  { %v49_v7 = vsub.f32 1.0, %v48_v6 }
   0xb   :  { %45 = vadd.xlane.f32.xlu0 %v44_v3 }
   0xc   :  { %v50_v8 = vmul.f32 %v273_v5, %v49_v7 }
   0xe   :  { %v51_v9 = vadd.f32 %v273_v5, %v50_v8 }
  0x10   :  { %v53_v10 = vsel %vm52_vm1, %v273_v5, %v51_v9 }
  0x76   :  { %v43_v11 = vpop.xlane.xlu0 %42 }
  0x77   :  { %v54_v12 = vmul.f32 %v53_v10, %v43_v11 }
  0x79   :  { %v56_v13 = vsub.f32 %v36_v0, %v54_v12  ;;  %v271_v0 = vld [vmem:[%s417_s8] ss:$0 sm:$0xff] }
  0x7b   :  { %v58_v14 = vmul.f32 %v56_v13, %v56_v13 }
  0x7d   :  { %v60_v15 = vsel %vm40_vm0, %v58_v14, 0.0 }
  0x7e   :  { %61 = vadd.xlane.f32.xlu1 %v60_v15  ;;  %v46_v16 = vpop.xlane.xlu0 %45 }
  0x7f   :  { %v55_v17 = vmul.f32 %v53_v10, %v46_v16 }
  0x81   :  { %v57_v18 = vsub.f32 %v37_v2, %v55_v17 }
  0x83   :  { %v59_v19 = vmul.f32 %v57_v18, %v57_v18 }
  0x85   :  { %v63_v20 = vsel %vm40_vm0, %v59_v19, 0.0 }
  0x86   :  { %64 = vadd.xlane.f32.xlu1 %v63_v20 }
  0xf1   :  { %v62_v24 = vpop.xlane.xlu1 %61 }
  0xf2   :  { %v66_v27 = vmul.f32 %v62_v24, %v53_v10 }
  0xf4   :  { %v68_v29 = vadd.f32 1e-05, %v66_v27 }
  0xf6   :  { %274 = vrsqrt.f32 %v68_v29  ;;  %vm76_vm3 = vweird.f32 %v68_v29 }
  0xf9   :  { %v65_v30 = vpop.xlane.xlu1 %64 }
  0xfa   :  { %v67_v31 = vmul.f32 %v65_v30, %v53_v10 }
  0xfc   :  { %v275_v32 = vpop.eup %274  ;;  %v69_v33 = vadd.f32 1e-05, %v67_v31 }
  0xfd   :  { %v71_v34 = vmul.f32 %v275_v32, %v68_v29  ;;  %vm77_vm2 = vweird.f32 %v275_v32 }
  0xfe   :  { %276 = vrsqrt.f32 %v69_v33  ;;  %vm78_vm4 = vmor %vm76_vm3, %vm77_vm2  ;;  %vm86_vm6 = vweird.f32 %v69_v33 }
  0xff   :  { %v72_v35 = vmul.f32 %v275_v32, %v71_v34 }
 0x101   :  { %v73_v36 = vmul.f32 0.5, %v72_v35 }
 0x103   :  { %v74_v37 = vsub.f32 1.5, %v73_v36 }
 0x104   :  { %v277_v38 = vpop.eup %276 }
 0x105   :  { %v75_v39 = vmul.f32 %v275_v32, %v74_v37  ;;  %v81_v40 = vmul.f32 %v277_v38, %v69_v33  ;;  %vm87_vm5 = vweird.f32 %v277_v38 }
 0x106   :  { %vm88_vm7 = vmor %vm86_vm6, %vm87_vm5 }
 0x107   :  { %v82_v41 = vmul.f32 %v277_v38, %v81_v40  ;;  %v79_v42 = vsel %vm78_vm4, %v275_v32, %v75_v39 }
 0x108   :  { %v90_v45 = vmul.f32 %v79_v42, %v56_v13 }
 0x109   :  { %v83_v43 = vmul.f32 0.5, %v82_v41 }
 0x10a   :  { %v95_v50 = vmul.f32 %v267_v46, %v90_v45 }
 0x10b   :  { %v84_v44 = vsub.f32 1.5, %v83_v43 }
 0x10c   :  { %v100_v53 = vadd.f32 %v268_v51, %v95_v50 }
 0x10d   :  { %v85_v47 = vmul.f32 %v277_v38, %v84_v44 }
 0x10f   :  { %v89_v48 = vsel %vm88_vm7, %v277_v38, %v85_v47 }
 0x110   :  { %v91_v49 = vmul.f32 %v89_v48, %v57_v18 }
 0x112   :  { %v96_v52 = vmul.f32 %v267_v46, %v91_v49 }
 0x114   :  { %v101_v54 = vadd.f32 %v268_v51, %v96_v52 }
 0x116   :  { %v102_v55 = vpack.c.bf16 %v101_v54, %v100_v53 }
 0x118   :  { %241 = vmatmul.msk.bf16.vlgmr.msra.gmra.mxu0 %vm40_vm0, %v102_v55  ;;  %250 = vmatmul.msk.bf16.vlgmr.msra.gmra.mxu1 %vm40_vm0, %v102_v55 }
 0x119   :  { %259 = vmatmul.msk.bf16.vlgmr.msra.gmra.mxu2 %vm40_vm0, %v102_v55 }
 0x195   :  { %v135_v58 = vpop.f32.mrf.mxu0  ;;  %v169_v59 = vpop.f32.mrf.mxu1 }
 0x196   :  { %v136_v60 = vadd.f32 %v269_v56, %v135_v58  ;;  %v170_v61 = vadd.f32 %v270_v57, %v169_v59 }
 0x198   :  { %v208_v62 = vpack.c.bf16 %v136_v60, %v136_v60  ;;  %v213_v63 = vpack.c.bf16 %v170_v61, %v170_v61 }
 0x19a   :  { %211 = vst.msk [vmem:[%s418_s9] sm:$0xf] %vm210_vm8, %v208_v62 }
 0x19b   :  { %215 = vst.msk [vmem:[%s419_s10] sm:$0xf] %vm210_vm8, %v213_v63 }
 0x19c   :  { %v203_v1 = vpop.f32.mrf.mxu2 }
 0x19d   :  { %v204_v2 = vadd.f32 %v271_v0, %v203_v1  ;;  %v137_v3 = vpop.f32.mrf.mxu0  ;;  %v171_v4 = vpop.f32.mrf.mxu1 }
 0x19e   :  { %v138_v5 = vadd.f32 %v269_v56, %v137_v3  ;;  %v172_v6 = vadd.f32 %v270_v57, %v171_v4 }
 0x19f   :  { %v217_v7 = vpack.c.bf16 %v204_v2, %v204_v2 }
 0x1a0   :  { %v209_v8 = vpack.c.bf16 %v138_v5, %v138_v5  ;;  %v214_v9 = vpack.c.bf16 %v172_v6, %v172_v6 }
 0x1a1   :  { %219 = vst.msk [vmem:[%s420_s11] sm:$0xf] %vm210_vm8, %v217_v7 }
 0x1a2   :  { %212 = vst.msk [vmem:[%s418_s9 + $0x4] sm:$0xf] %vm210_vm8, %v209_v8 }
 0x1a3   :  { %216 = vst.msk [vmem:[%s419_s10 + $0x4] sm:$0xf] %vm210_vm8, %v214_v9 }
 0x1a4   :  { %v205_v10 = vpop.f32.mrf.mxu2 }
 0x1a5   :  { %v206_v11 = vadd.f32 %v271_v0, %v205_v10 }
 0x1a7   :  { %v218_v12 = vpack.c.bf16 %v206_v11, %v206_v11 }
 0x1a9   :  { %220 = vst.msk [vmem:[%s420_s11 + $0x4] sm:$0xf] %vm210_vm8, %v218_v12 }

// kernel: gpt2_alibi_forward.9
= control target key start
LH: loop header
LB: loop body
LE: loop exit
PB: predicated region body
PF: predicated region fallthrough
CT: control target
= control target key end

     0   :  { %vm61_vm0 = vcmask 261120   ;;  %v405_v14 = vmov 32.0   ;;  %s551_s2 = inlined_call_operand.vmem [shape: bf16[32,32], index: 2, kind: input, shape index: {}]   ;;  %s552_s3 = inlined_call_operand.vmem [shape: f32[1,32], index: 3, kind: input, shape index: {}]   ;;  %s553_s1 = inlined_call_operand.vmem [shape: bf16[16,32], index: 1, kind: input, shape index: {}]   ;;  %s554_s0 = inlined_call_operand.vmem [shape: f32[16,32], index: 0, kind: input, shape index: {}]   ;;  %s555_s4 = inlined_call_operand.vmem [shape: f32[1,32], index: 4, kind: input, shape index: {}]   ;;  %s556_s5 = inlined_call_operand.vmem [shape: f32[1,32], index: 5, kind: input, shape index: {}]   ;;  %s557_s7 = inlined_call_operand.vmem [shape: f32[1,64], index: 7, kind: input, shape index: {}]   ;;  %s558_s6 = inlined_call_operand.vmem [shape: bf16[32,64], index: 6, kind: input, shape index: {}]   ;;  %s559_s9 = inlined_call_operand.vmem [shape: f32[1,32], index: 9, kind: input, shape index: {}]   ;;  %s560_s8 = inlined_call_operand.vmem [shape: bf16[64,32], index: 8, kind: input, shape index: {}]   ;;  %s561_s10 = inlined_call_operand.vmem [shape: f32[16,32], index: 10, kind: output, shape index: {}]  }
   0x1   :  { %v382_v0 = vld [vmem:[%s551_s2 + $0x8] sm:$0xff]  ;;  %v381_v1 = vld [vmem:[%s551_s2] sm:$0xff]  ;;  %395 = vrcp.f32 %v405_v14 }
   0x2   :  { %71 = vmatpush.bf16.msra.mxu0 %v382_v0  ;;  %v380_v2 = vld [vmem:[%s553_s1] sm:$0xff]  ;;  %v37_v9 = vld [vmem:[%s554_s0 + $0x8] sm:$0xff] }
   0x3   :  { %v36_v3 = vld [vmem:[%s554_s0] sm:$0xff]  ;;  %v384_v31 = vld [vmem:[%s558_s6 + $0x8] sm:$0xff] }
   0x4   :  { %v390_v4 = vld [vmem:[%s552_s3] ss:$0 sm:$0xff]  ;;  %180 = vmatpush.bf16.msra.mxu1 %v384_v31 }
   0x5   :  { %v383_v33 = vld [vmem:[%s558_s6] sm:$0xff] }
   0x6   :  { %72 = vmatpush.bf16.msra.mxu0 %v381_v1  ;;  %v391_v52 = vld [vmem:[%s555_s4] ss:$0 sm:$0xff] }
   0x7   :  { %v396_v15 = vpop.eup %395  ;;  %v392_v57 = vld [vmem:[%s556_s5] ss:$0 sm:$0xff] }
   0x8   :  { %v96_v16 = vmul.f32 32.0, %v396_v15  ;;  %vm100_vm1 = vweird.f32 %v396_v15  ;;  %181 = vmatpush.bf16.msra.mxu1 %v383_v33  ;;  %v393_v62 = vld [vmem:[%s557_s7] ss:$0 sm:$0xff] }
   0x9   :  { %351 = vmatmul.msk.bf16.vlgmr.msra.gmra.mxu0 %vm61_vm0, %v380_v2 }
   0xa   :  { %v97_v17 = vsub.f32 1.0, %v96_v16 }
   0xc   :  { %v98_v18 = vmul.f32 %v396_v15, %v97_v17 }
   0xe   :  { %v99_v19 = vadd.f32 %v396_v15, %v98_v18 }
  0x10   :  { %v101_v20 = vsel %vm100_vm1, %v396_v15, %v99_v19  ;;  %v388_v19 = vld [vmem:[%s560_s8 + $0x18] sm:$0xff]  ;;  %vm313_vm1 = vcmask 523264  }
  0x11   :  { %321 = vmatpush.bf16.msra.mxu2 %v388_v19 }
  0x86   :  { %v74_v5 = vpop.f32.mrf.mxu0 }
  0x87   :  { %v79_v6 = vadd.f32 %v74_v5, %v36_v3 }
  0x89   :  { %v477_v7 = vadd.f32 %v390_v4, %v79_v6 }
  0x8b   :  { %v89_v8 = vsel %vm61_vm0, %v477_v7, 0.0 }
  0x8c   :  { %90 = vadd.xlane.f32.xlu0 %v89_v8 }
  0x8e   :  { %v76_v10 = vpop.f32.mrf.mxu0 }
  0x8f   :  { %v80_v11 = vadd.f32 %v76_v10, %v37_v9 }
  0x91   :  { %v484_v12 = vadd.f32 %v390_v4, %v80_v11 }
  0x93   :  { %v92_v13 = vsel %vm61_vm0, %v484_v12, 0.0 }
  0x94   :  { %93 = vadd.xlane.f32.xlu0 %v92_v13 }
  0xff   :  { %v91_v21 = vpop.xlane.xlu0 %90 }
 0x100   :  { %v102_v22 = vmul.f32 %v101_v20, %v91_v21 }
 0x102   :  { %v104_v23 = vsub.f32 %v477_v7, %v102_v22 }
 0x104   :  { %v106_v24 = vmul.f32 %v104_v23, %v104_v23 }
 0x106   :  { %v108_v25 = vsel %vm61_vm0, %v106_v24, 0.0 }
 0x107   :  { %109 = vadd.xlane.f32.xlu1 %v108_v25  ;;  %v94_v26 = vpop.xlane.xlu0 %93 }
 0x108   :  { %v103_v27 = vmul.f32 %v101_v20, %v94_v26 }
 0x10a   :  { %v105_v28 = vsub.f32 %v484_v12, %v103_v27  ;;  %v387_v27 = vld [vmem:[%s560_s8 + $0x10] sm:$0xff] }
 0x10b   :  { %322 = vmatpush.bf16.msra.mxu2 %v387_v27 }
 0x10c   :  { %v107_v29 = vmul.f32 %v105_v28, %v105_v28 }
 0x10e   :  { %v111_v30 = vsel %vm61_vm0, %v107_v29, 0.0 }
 0x10f   :  { %112 = vadd.xlane.f32.xlu1 %v111_v30 }
 0x17a   :  { %v110_v32 = vpop.xlane.xlu1 %109 }
 0x17b   :  { %v114_v34 = vmul.f32 %v110_v32, %v101_v20 }
 0x17d   :  { %v116_v35 = vadd.f32 1e-05, %v114_v34 }
 0x17f   :  { %397 = vrsqrt.f32 %v116_v35  ;;  %vm124_vm3 = vweird.f32 %v116_v35 }
 0x182   :  { %v113_v36 = vpop.xlane.xlu1 %112 }
 0x183   :  { %v115_v37 = vmul.f32 %v113_v36, %v101_v20 }
 0x185   :  { %v398_v38 = vpop.eup %397  ;;  %v117_v39 = vadd.f32 1e-05, %v115_v37 }
 0x186   :  { %v119_v40 = vmul.f32 %v398_v38, %v116_v35  ;;  %vm125_vm2 = vweird.f32 %v398_v38  ;;  %v386_v35 = vld [vmem:[%s560_s8 + $0x8] sm:$0xff] }
 0x187   :  { %399 = vrsqrt.f32 %v117_v39  ;;  %vm126_vm4 = vmor %vm124_vm3, %vm125_vm2  ;;  %vm134_vm6 = vweird.f32 %v117_v39  ;;  %323 = vmatpush.bf16.msra.mxu2 %v386_v35 }
 0x188   :  { %v120_v41 = vmul.f32 %v398_v38, %v119_v40 }
 0x18a   :  { %v121_v42 = vmul.f32 0.5, %v120_v41  ;;  %v385_v41 = vld [vmem:[%s560_s8] sm:$0xff] }
 0x18b   :  { %324 = vmatpush.bf16.msra.mxu2 %v385_v41 }
 0x18c   :  { %v122_v43 = vsub.f32 1.5, %v121_v42 }
 0x18d   :  { %v400_v44 = vpop.eup %399 }
 0x18e   :  { %v123_v45 = vmul.f32 %v398_v38, %v122_v43  ;;  %v129_v46 = vmul.f32 %v400_v44, %v117_v39  ;;  %vm135_vm5 = vweird.f32 %v400_v44 }
 0x18f   :  { %vm136_vm7 = vmor %vm134_vm6, %vm135_vm5 }
 0x190   :  { %v130_v47 = vmul.f32 %v400_v44, %v129_v46  ;;  %v127_v48 = vsel %vm126_vm4, %v398_v38, %v123_v45 }
 0x191   :  { %v138_v51 = vmul.f32 %v127_v48, %v104_v23 }
 0x192   :  { %v131_v49 = vmul.f32 0.5, %v130_v47 }
 0x193   :  { %v143_v56 = vmul.f32 %v391_v52, %v138_v51 }
 0x194   :  { %v132_v50 = vsub.f32 1.5, %v131_v49 }
 0x195   :  { %v148_v59 = vadd.f32 %v392_v57, %v143_v56 }
 0x196   :  { %v133_v53 = vmul.f32 %v400_v44, %v132_v50 }
 0x198   :  { %v137_v54 = vsel %vm136_vm7, %v400_v44, %v133_v53 }
 0x199   :  { %v139_v55 = vmul.f32 %v137_v54, %v105_v28 }
 0x19b   :  { %v144_v58 = vmul.f32 %v391_v52, %v139_v55 }
 0x19d   :  { %v149_v60 = vadd.f32 %v392_v57, %v144_v58 }
 0x19f   :  { %v150_v61 = vpack.c.bf16 %v149_v60, %v148_v59 }
 0x1a1   :  { %360 = vmatmul.msk.bf16.vlgmr.msra.gmra.mxu1 %vm61_vm0, %v150_v61 }
 0x21e   :  { %v183_v63 = vpop.f32.mrf.mxu1 }
 0x21f   :  { %v508_v0 = vadd.f32 %v393_v62, %v183_v63 }
 0x221   :  { %v511_v1 = vmul.f32 0.70710677, %v508_v0 }
 0x223   :  { %v192_v2 = vmul.f32 %v511_v1, %v511_v1 }
 0x225   :  { %v193_v3 = vmin.f32 %v192_v2, 16.0 }
 0x226   :  { %v185_v4 = vpop.f32.mrf.mxu1 }
 0x227   :  { %v194_v5 = vmul.f32 2.1237322e-06, %v193_v3  ;;  %v205_v6 = vmul.f32 3.8918573e-05, %v193_v3  ;;  %v515_v8 = vadd.f32 %v393_v62, %v185_v4 }
 0x229   :  { %v195_v9 = vadd.f32 0.00028619796, %v194_v5  ;;  %v206_v10 = vadd.f32 0.001143296, %v205_v6  ;;  %v518_v11 = vmul.f32 0.70710677, %v515_v8 }
 0x22b   :  { %v207_v13 = vmul.f32 %v206_v10, %v193_v3  ;;  %v232_v14 = vmul.f32 %v518_v11, %v518_v11  ;;  %v196_v15 = vmul.f32 %v195_v9, %v193_v3 }
 0x22d   :  { %v208_v16 = vadd.f32 0.014752088, %v207_v13  ;;  %v233_v17 = vmin.f32 %v232_v14, 16.0  ;;  %v197_v22 = vadd.f32 0.0036580483, %v196_v15 }
 0x22f   :  { %v209_v18 = vmul.f32 %v208_v16, %v193_v3  ;;  %v234_v20 = vmul.f32 2.1237322e-06, %v233_v17  ;;  %v245_v21 = vmul.f32 3.8918573e-05, %v233_v17  ;;  %v198_v30 = vmul.f32 %v197_v22, %v193_v3 }
 0x231   :  { %v210_v23 = vadd.f32 0.112945676, %v209_v18  ;;  %v235_v24 = vadd.f32 0.00028619796, %v234_v20  ;;  %v246_v25 = vadd.f32 0.001143296, %v245_v21 }
 0x232   :  { %v199_v37 = vadd.f32 0.05243302, %v198_v30 }
 0x233   :  { %v211_v26 = vmul.f32 %v210_v23, %v193_v3  ;;  %v236_v28 = vmul.f32 %v235_v24, %v233_v17  ;;  %v247_v29 = vmul.f32 %v246_v25, %v233_v17  ;;  %v188_v23 = vmul.f32 0.5, %v508_v0 }
 0x234   :  { %v200_v43 = vmul.f32 %v199_v37, %v193_v3  ;;  %v189_v24 = vmul.f32 0.5, %v515_v8 }
 0x235   :  { %v212_v31 = vadd.f32 0.4994258, %v211_v26  ;;  %v237_v32 = vadd.f32 0.0036580483, %v236_v28  ;;  %v248_v33 = vadd.f32 0.014752088, %v247_v29 }
 0x236   :  { %v201_v48 = vadd.f32 0.18741608, %v200_v43 }
 0x237   :  { %v213_v34 = vmul.f32 %v212_v31, %v193_v3  ;;  %v249_v36 = vmul.f32 %v248_v33, %v233_v17  ;;  %v238_v39 = vmul.f32 %v237_v32, %v233_v17 }
 0x238   :  { %v202_v53 = vmul.f32 %v201_v48, %v193_v3 }
 0x239   :  { %v214_v38 = vadd.f32 1.0, %v213_v34  ;;  %v250_v40 = vadd.f32 0.112945676, %v249_v36  ;;  %v239_v44 = vadd.f32 0.05243302, %v238_v39 }
 0x23a   :  { %v203_v59 = vadd.f32 1.1283791, %v202_v53 }
 0x23b   :  { %401 = vrcp.f32 %v214_v38  ;;  %v251_v42 = vmul.f32 %v250_v40, %v233_v17  ;;  %v240_v50 = vmul.f32 %v239_v44, %v233_v17  ;;  %v226_v55 = vand.u32 2147483648, %v214_v38 }
 0x23c   :  { %v224_v57 = vand.u32 2147483647, %v214_v38  ;;  %vm220_vm9 = vweird.f32 %v214_v38  ;;  %v204_v5 = vmul.f32 %v203_v59, %v511_v1 }
 0x23d   :  { %v252_v45 = vadd.f32 0.4994258, %v251_v42  ;;  %v241_v56 = vadd.f32 0.18741608, %v240_v50  ;;  %v227_v62 = vor.u32 1.1754944e-38, %v226_v55 }
 0x23e   :  { %vm225_vm11 = vcmp.eq.f32.partialorder %v224_v57, 8.507059e+37 }
 0x23f   :  { %v253_v46 = vmul.f32 %v252_v45, %v233_v17  ;;  %v242_v63 = vmul.f32 %v241_v56, %v233_v17 }
 0x241   :  { %v402_v47 = vpop.eup %401  ;;  %v254_v51 = vadd.f32 1.0, %v253_v46  ;;  %v243_v3 = vadd.f32 1.1283791, %v242_v63 }
 0x242   :  { %v216_v49 = vmul.f32 %v402_v47, %v214_v38  ;;  %vm221_vm8 = vweird.f32 %v402_v47 }
 0x243   :  { %403 = vrcp.f32 %v254_v51  ;;  %vm222_vm10 = vmor %vm220_vm9, %vm221_vm8  ;;  %v266_v9 = vand.u32 2147483648, %v254_v51  ;;  %v264_v14 = vand.u32 2147483647, %v254_v51  ;;  %vm260_vm13 = vweird.f32 %v254_v51 }
 0x244   :  { %v217_v52 = vsub.f32 1.0, %v216_v49  ;;  %v244_v19 = vmul.f32 %v243_v3, %v518_v11  ;;  %v394_v11 = vld [vmem:[%s559_s9] ss:$0 sm:$0xff] }
 0x245   :  { %v267_v16 = vor.u32 1.1754944e-38, %v266_v9  ;;  %vm265_vm15 = vcmp.eq.f32.partialorder %v264_v14, 8.507059e+37 }
 0x246   :  { %v218_v54 = vmul.f32 %v402_v47, %v217_v52 }
 0x248   :  { %v219_v58 = vadd.f32 %v402_v47, %v218_v54 }
 0x249   :  { %v404_v60 = vpop.eup %403 }
 0x24a   :  { %v223_v61 = vsel %vm222_vm10, %v402_v47, %v219_v58  ;;  %v256_v2 = vmul.f32 %v404_v60, %v254_v51  ;;  %vm261_vm12 = vweird.f32 %v404_v60 }
 0x24b   :  { %v228_v4 = vsel %vm225_vm11, %v227_v62, %v223_v61  ;;  %vm262_vm14 = vmor %vm260_vm13, %vm261_vm12 }
 0x24c   :  { %v257_v6 = vsub.f32 1.0, %v256_v2  ;;  %v229_v10 = vmul.f32 %v228_v4, %v204_v5 }
 0x24e   :  { %v258_v13 = vmul.f32 %v404_v60, %v257_v6  ;;  %v361_v18 = vclamps-f32 %v229_v10, 1.0 }
 0x250   :  { %v259_v15 = vadd.f32 %v404_v60, %v258_v13  ;;  %v272_v22 = vadd.f32 1.0, %v361_v18 }
 0x252   :  { %v263_v17 = vsel %vm262_vm14, %v404_v60, %v259_v15  ;;  %v274_v26 = vmul.f32 %v272_v22, %v188_v23 }
 0x253   :  { %v268_v20 = vsel %vm265_vm15, %v267_v16, %v263_v17 }
 0x254   :  { %v269_v21 = vmul.f32 %v268_v20, %v244_v19 }
 0x256   :  { %v362_v1 = vclamps-f32 %v269_v21, 1.0 }
 0x258   :  { %v273_v25 = vadd.f32 1.0, %v362_v1 }
 0x25a   :  { %v275_v27 = vmul.f32 %v273_v25, %v189_v24 }
 0x25c   :  { %v276_v28 = vpack.c.bf16 %v275_v27, %v274_v26 }
 0x25e   :  { %379 = vmatmul.msk.bf16.vlgmr.msra.gmra.mxu2 %vm313_vm1, %v276_v28 }
 0x2e1   :  { %v326_v29 = vpop.f32.mrf.mxu2 }
 0x2e2   :  { %v327_v30 = vadd.f32 %v394_v11, %v326_v29 }
 0x2e4   :  { %v331_v31 = vadd.f32 %v327_v30, %v477_v7 }
 0x2e6   :  { %333 = vst.msk [vmem:[%s561_s10] sm:$0xff] %vm61_vm0, %v331_v31 }
 0x2e9   :  { %v328_v0 = vpop.f32.mrf.mxu2 }
 0x2ea   :  { %v329_v8 = vadd.f32 %v394_v11, %v328_v0 }
 0x2ec   :  { %v332_v32 = vadd.f32 %v329_v8, %v484_v12 }
 0x2ee   :  { %334 = vst.msk [vmem:[%s561_s10 + $0x8] sm:$0xff] %vm61_vm0, %v332_v32 }

// kernel: gpt2_alibi_forward.13
= control target key start
LH: loop header
LB: loop body
LE: loop exit
PB: predicated region body
PF: predicated region fallthrough
CT: control target
= control target key end

     0   :  { %vm22_vm0 = vcmask 254976   ;;  %s249_s0 = inlined_call_operand.vmem [shape: f32[2,32], index: 0, kind: input, shape index: {}]   ;;  %s250_s1 = inlined_call_operand.vmem [shape: f32[1,32], index: 1, kind: input, shape index: {}]   ;;  %s251_s2 = inlined_call_operand.vmem [shape: f32[1,32], index: 2, kind: input, shape index: {}]   ;;  %s252_s3 = inlined_call_operand.vmem [shape: bf16[64,32], index: 3, kind: input, shape index: {}]   ;;  %s253_s4 = inlined_call_operand.hbm [shape: f32[2,64], index: 4, kind: output, shape index: {}]  }
   0x1   :  { %v19_v0 = vld [vmem:[%s249_s0] sm:$0x3] }
   0x2   :  { %v23_v1 = vsel %vm22_vm0, %v19_v0, 0.0 }
   0x3   :  { %9 = vsyncpa [#allocation3], 0  ;;  %24 = vadd.xlane.f32.xlu0 %v23_v1  ;;  %v191_v2 = vmov 32.0   ;;  %v156_v3 = vld [vmem:[%s252_s3 + $0x18] sm:$0xff]  ;;  %vm89_vm1 = vcmask 261120   ;;  %v155_v16 = vld [vmem:[%s252_s3 + $0x10] sm:$0xff] }
   0x4   :  { %161 = vrcp.f32 %v191_v2  ;;  %v103_v4 = vsel %vm89_vm1, %v156_v3, 0  ;;  %v100_v17 = vsel %vm89_vm1, %v155_v16, 0  ;;  %v154_v18 = vld [vmem:[%s252_s3 + $0x8] sm:$0xff]  ;;  %v153_v20 = vld [vmem:[%s252_s3] sm:$0xff]  ;;  %s192_s27 = smov [#allocation2]   ;;  %s127_s5 = sshll.u32 %s253_s4, 4  ;;  %s128_s5 = int_to_ptr.hbm [resolvable:$true] %s127_s5 }
   0x5   :  { %109 = vmatpush.bf16.xpose.msra.mxu0 %v103_v4  ;;  %v97_v19 = vsel %vm89_vm1, %v154_v18, 0  ;;  %v94_v21 = vsel %vm89_vm1, %v153_v20, 0  ;;  %v159_v31 = vld [vmem:[%s250_s1] ss:$0 sm:$0xff]  ;;  %s125_s28 = sshll.u32 %s192_s27, 4  ;;  %vm118_vm6 = vcmask 517120   ;;  %s126_s28 = int_to_ptr.vmem [resolvable:$true] %s125_s28 }
   0x6   :  { %v160_v34 = vld [vmem:[%s251_s2] ss:$0 sm:$0xff] }
   0xa   :  { %v162_v5 = vpop.eup %161 }
   0xb   :  { %v27_v6 = vmul.f32 32.0, %v162_v5  ;;  %vm31_vm2 = vweird.f32 %v162_v5 }
   0xd   :  { %v28_v7 = vsub.f32 1.0, %v27_v6  ;;  %110 = vmatpush.bf16.xpose.msra.mxu0 %v100_v17 }
   0xf   :  { %v29_v8 = vmul.f32 %v162_v5, %v28_v7 }
  0x11   :  { %v30_v9 = vadd.f32 %v162_v5, %v29_v8 }
  0x13   :  { %v32_v10 = vsel %vm31_vm2, %v162_v5, %v30_v9 }
  0x15   :  { %111 = vmatpush.bf16.xpose.msra.mxu0 %v97_v19 }
  0x1d   :  { %112 = vmatpush.bf16.xpose.msra.mxu0 %v94_v21 }
  0x76   :  { %v25_v11 = vpop.xlane.xlu0 %24 }
  0x77   :  { %v33_v12 = vmul.f32 %v32_v10, %v25_v11 }
  0x79   :  { %v34_v13 = vsub.f32 %v19_v0, %v33_v12 }
  0x7b   :  { %v35_v14 = vmul.f32 %v34_v13, %v34_v13 }
  0x7d   :  { %v36_v15 = vsel %vm22_vm0, %v35_v14, 0.0 }
  0x7e   :  { %37 = vadd.xlane.f32.xlu0 %v36_v15 }
  0xf1   :  { %v38_v22 = vpop.xlane.xlu0 %37 }
  0xf2   :  { %v39_v23 = vmul.f32 %v38_v22, %v32_v10 }
  0xf4   :  { %v40_v24 = vadd.f32 1e-05, %v39_v23 }
  0xf6   :  { %163 = vrsqrt.f32 %v40_v24  ;;  %vm47_vm4 = vweird.f32 %v40_v24 }
  0xfc   :  { %v164_v25 = vpop.eup %163 }
  0xfd   :  { %v42_v26 = vmul.f32 %v164_v25, %v40_v24  ;;  %vm48_vm3 = vweird.f32 %v164_v25 }
  0xfe   :  { %vm49_vm5 = vmor %vm47_vm4, %vm48_vm3 }
  0xff   :  { %v43_v27 = vmul.f32 %v164_v25, %v42_v26 }
 0x101   :  { %v44_v28 = vmul.f32 0.5, %v43_v27 }
 0x103   :  { %v45_v29 = vsub.f32 1.5, %v44_v28 }
 0x105   :  { %v46_v30 = vmul.f32 %v164_v25, %v45_v29 }
 0x107   :  { %v50_v32 = vsel %vm49_vm5, %v164_v25, %v46_v30 }
 0x108   :  { %v51_v33 = vmul.f32 %v50_v32, %v34_v13 }
 0x10a   :  { %v55_v35 = vmul.f32 %v159_v31, %v51_v33 }
 0x10c   :  { %v59_v36 = vadd.f32 %v160_v34, %v55_v35 }
 0x10e   :  { %v60_v37 = vpack.c.bf16 %v59_v36, %v59_v36 }
 0x110   :  { %152 = vmatmul.msk.bf16.vlgmr.msra.gmra.mxu0 %vm89_vm1, %v60_v37 }
 0x18d   :  { %v114_v38 = vpop.f32.mrf.mxu0 }
 0x18e   :  { %119 = vst.msk [vmem:[#allocation2] sm:$0x3] %vm118_vm6, %v114_v38 }
 0x18f   :  { %130 = dma.vmem_to_hbm [thread:$0]  %s126_s28, 32, %s128_s5, [#allocation3]  }
 0x195   :  { %v116_v39 = vpop.f32.mrf.mxu0 }
 0x196   :  { %189 = dma.done.wait [#allocation3], 32  }
 0x197   :  { %190 = vsyncadd [#allocation3], 4294967264 }
 0x198   :  { %135 = vsyncpa [#allocation3], 1 }

// kernel: gpt2_alibi_forward.8
= control target key start
LH: loop header
LB: loop body
LE: loop exit
PB: predicated region body
PF: predicated region fallthrough
CT: control target
= control target key end

     0   :  { %s983_s15 = smov 0   ;;  %s985_s16 = smov 0   ;;  %s1140_s0 = inlined_call_operand.vmem [shape: bf16[2,4,8,8], index: 0, kind: input, shape index: {}]   ;;  %s1141_s1 = inlined_call_operand.vmem [shape: bf16[2,4,8,8], index: 1, kind: input, shape index: {}]   ;;  %s1142_s2 = inlined_call_operand.vmem [shape: bf16[2,4,8,8], index: 2, kind: input, shape index: {}]   ;;  %s1143_s3 = inlined_call_operand.vmem [shape: f32[4,1,1], index: 3, kind: input, shape index: {}]   ;;  %s1144_s4 = inlined_call_operand.vmem [shape: bf16[2,4,8,8], index: 4, kind: output, shape index: {}]  }
   0x1   :  { %s987_s17 = smov 0  }
   0x2 LB: > { %s33_s18 = sadd.s32 1, %s949_s16  ;;  %p848_p0 = scmp.ge.s32.totalorder %s953_s17, 1  ;;  %s953_s17 = sphi %s987_s17, %s14_s17   ;;  %s949_s16 = sphi %s985_s16, %s1146_s16   ;;  %s945_s15 = sphi %s983_s15, %s1145_s15  }
   0x3   : > { %p35_p1 = scmp.ge.s32.totalorder %s33_s18, 2  ;;  %p218_p2 = scmp.lt.s32.totalorder %s953_s17, 3 }
   0x5   : > { %s1148_s18 = smov (%p35_p1, %s33_s18), 0  ;;  %p219_p3 = pnand %p848_p0, %p218_p2 }
   0x6   : > { %p266_p4 = scmp.lt.s32.totalorder (!%p219_p3), %s945_s15, 1 }
   0x7   : > { %222 = sbr.rel (%p219_p3) target bundleno = 653 (0x28d), region = 36 }
   0xc   : > { %v955_v0 = vmov 0   ;;  %v903_v1 = vld [vmem:[%s1143_s3] ss:$0 sm:$0xff]  ;;  %v904_v2 = vld [vmem:[%s1143_s3 + $0x2] ss:$0 sm:$0xff]  ;;  %s1150_s15 = smov (!%p266_p4, %s945_s15), 1  ;;  %v411_v17 = vlaneseq }
   0xd   : > { %901 = vset.pattern.permute.xlu1 %v955_v0  ;;  %900 = vset.pattern.permute.xlu0 %v955_v0  ;;  %s1007_s23 = sshll.u32 %s1150_s15, 4  ;;  %vm312_vm0 = vcmask 64512   ;;  %v905_v3 = vld [vmem:[%s1143_s3 + $0x1] ss:$0 sm:$0xff]  ;;  %v906_v4 = vld [vmem:[%s1143_s3 + $0x3] ss:$0 sm:$0xff] }
   0xe   : > { %902 = vset.pattern.permute.xlu2 %v955_v0  ;;  %437 = vperm.xlu1 %901, %v903_v1   ;;  %s281_s26 = scalar_lea.vmem %s1141_s1, %s1007_s23  ;;  %s273_s7 = scalar_lea.vmem %s1140_s0, %s1007_s23  ;;  %v412_v18 = vshrl.u32 %v411_v17, 7  ;;  %v417_v19 = vand.u32 127, %v411_v17  ;;  %vm303_vm1 = vcmask 7168   ;;  %v956_v22 = vmov -inf  }
   0xf   : > { %445 = vperm.xlu0 %900, %v904_v2   ;;  %v321_v5 = vld [vmem:[%s281_s26] sm:$0xf]  ;;  %v322_v6 = vld [vmem:[%s281_s26 + $0x4] sm:$0xf]  ;;  %v323_v7 = vld [vmem:[%s281_s26 + $0x8] sm:$0xf]  ;;  %s289_s10 = scalar_lea.vmem %s1142_s2, %s1007_s23  ;;  %s297_s13 = scalar_lea.vmem %s1144_s4, %s1007_s23 }
  0x10   : > { %v334_v8 = vsel %vm312_vm0, %v321_v5, 0  ;;  %v353_v9 = vsel %vm312_vm0, %v322_v6, 0  ;;  %v372_v10 = vsel %vm312_vm0, %v323_v7, 0  ;;  %v324_v11 = vld [vmem:[%s281_s26 + $0xc] sm:$0xf]  ;;  %v420_v21 = vsub.s32 %v417_v19, %v412_v18  ;;  %305 = vst.msk [vmem:[#allocation2 + $0x8] sm:$0xff] %vm303_vm1, %v956_v22 }
  0x11   : > { %343 = vmatpush.bf16.xpose.msra.mxu0 %v334_v8  ;;  %362 = vmatpush.bf16.xpose.msra.mxu1 %v353_v9  ;;  %v391_v12 = vsel %vm312_vm0, %v324_v11, 0  ;;  %v317_v13 = vld [vmem:[%s273_s7] sm:$0xf]  ;;  %v318_v14 = vld [vmem:[%s273_s7 + $0x4] sm:$0xf]  ;;  %304 = vst.msk [vmem:[#allocation2] sm:$0xff] %vm303_vm1, %v956_v22 }
  0x12   : > { %381 = vmatpush.bf16.xpose.msra.mxu2 %v372_v10  ;;  %400 = vmatpush.bf16.xpose.msra.mxu3 %v391_v12  ;;  %v319_v15 = vld [vmem:[%s273_s7 + $0x8] sm:$0xf]  ;;  %v320_v16 = vld [vmem:[%s273_s7 + $0xc] sm:$0xf]  ;;  %v861_v23 = vcvt.s32.f32 %v420_v21  ;;  %306 = vst.msk [vmem:[#allocation2 + $0x10] sm:$0xff] %vm303_vm1, %v956_v22  ;;  %vm421_vm2 = vcmp.lt.s32.totalorder %v420_v21, 0 }
  0x13   : > { %307 = vst.msk [vmem:[#allocation2 + $0x18] sm:$0xff] %vm303_vm1, %v956_v22  ;;  %v957_v52 = vmov 0.0   ;;  %v325_v5 = vld [vmem:[%s289_s10] sm:$0xf]  ;;  %vm588_vm3 = vcmask 1043456   ;;  %vm717_vm4 = vcmask 60416  }
  0x14   : > { %v862_v24 = vsel %vm421_vm2, %v861_v23, 0.0  ;;  %308 = vst.msk [vmem:[#allocation3] sm:$0xff] %vm303_vm1, %v957_v52  ;;  %v590_v6 = vsel %vm588_vm3, %v325_v5, 0  ;;  %v327_v7 = vld [vmem:[%s289_s10 + $0x8] sm:$0xf] }
  0x15   : > { %309 = vst.msk [vmem:[#allocation3 + $0x8] sm:$0xff] %vm303_vm1, %v957_v52  ;;  %v628_v8 = vsel %vm588_vm3, %v327_v7, 0  ;;  %v328_v9 = vld [vmem:[%s289_s10 + $0xc] sm:$0xf]  ;;  %v326_v11 = vld [vmem:[%s289_s10 + $0x4] sm:$0xf] }
  0x16   : > { %441 = vperm.xlu1 %901, %v905_v3   ;;  %310 = vst.msk [vmem:[#allocation3 + $0x10] sm:$0xff] %vm303_vm1, %v957_v52  ;;  %v647_v10 = vsel %vm588_vm3, %v328_v9, 0  ;;  %v609_v12 = vsel %vm588_vm3, %v326_v11, 0 }
  0x17   : > { %449 = vperm.xlu0 %900, %v906_v4   ;;  %311 = vst.msk [vmem:[#allocation3 + $0x18] sm:$0xff] %vm303_vm1, %v957_v52  ;;  %v1059_v53 = vld [vmem:[#allocation2 + $0x8] sm:$0xff] }
  0x18   : > { %857 = vmatmul.msk.bf16.vlgmr.msra.gmra.mxu0 %vm312_vm0, %v317_v13  ;;  %858 = vmatmul.msk.bf16.vlgmr.msra.gmra.mxu1 %vm312_vm0, %v318_v14  ;;  %313 = vst.msk [vmem:[#allocation4] sm:$0xff] %vm312_vm0, %v957_v52  ;;  %v1061_v54 = vld [vmem:[#allocation2] sm:$0xff] }
  0x19   : > { %859 = vmatmul.msk.bf16.vlgmr.msra.gmra.mxu2 %vm312_vm0, %v319_v15  ;;  %860 = vmatmul.msk.bf16.vlgmr.msra.gmra.mxu3 %vm312_vm0, %v320_v16  ;;  %314 = vst.msk [vmem:[#allocation4 + $0x8] sm:$0xff] %vm312_vm0, %v957_v52  ;;  %v1078_v61 = vld [vmem:[#allocation2 + $0x10] sm:$0xff] }
  0x1a   : > { %315 = vst.msk [vmem:[#allocation4 + $0x10] sm:$0xff] %vm312_vm0, %v957_v52  ;;  %v463_v1 = vld [vmem:[#allocation2 + $0x18] sm:$0xff]  ;;  %599 = vmatpush.bf16.msrb.mxu0 %v590_v6  ;;  %637 = vmatpush.bf16.msrb.mxu2 %v628_v8 }
  0x1b   : > { %316 = vst.msk [vmem:[#allocation4 + $0x18] sm:$0xff] %vm312_vm0, %v957_v52  ;;  %656 = vmatpush.bf16.msrb.mxu3 %v647_v10  ;;  %618 = vmatpush.bf16.msrb.mxu1 %v609_v12 }
  0x20   : > { %v554_v8 = vld [vmem:[#allocation4 + $0x8] sm:$0xff] }
  0x80   : > { %v438_v20 = vpop.permute.xlu1 %437 }
  0x81   : > { %v452_v26 = vmul.f32 %v862_v24, %v438_v20  ;;  %v446_v27 = vpop.permute.xlu0 %445 }
  0x82   : > { %v454_v37 = vmul.f32 %v862_v24, %v446_v27 }
  0x88   : > { %v442_v25 = vpop.permute.xlu1 %441 }
  0x89   : > { %v453_v28 = vmul.f32 %v862_v24, %v442_v25  ;;  %v450_v43 = vpop.permute.xlu0 %449 }
  0x8a   : > { %v455_v45 = vmul.f32 %v862_v24, %v450_v43 }
  0x95   : > { %v345_v29 = vpop.f32.mrf.mxu0  ;;  %v364_v30 = vpop.f32.mrf.mxu1 }
  0x96   : > { %v406_v31 = vmul.f32 0.35355338, %v345_v29  ;;  %v407_v32 = vmul.f32 0.35355338, %v364_v30 }
  0x98   : > { %v1035_v33 = vadd.f32 %v453_v28, %v407_v32  ;;  %v1037_v34 = vadd.f32 %v452_v26, %v406_v31 }
  0x9a   : > { %v467_v35 = vsel %vm312_vm0, %v1035_v33, -inf  ;;  %v464_v36 = vsel %vm312_vm0, %v1037_v34, -inf }
  0x9b   : > { %468 = vmax.xlane.f32.xlu1 %v467_v35  ;;  %465 = vmax.xlane.f32.xlu0 %v464_v36 }
  0x9c   : > { %v383_v38 = vpop.f32.mrf.mxu2  ;;  %v402_v39 = vpop.f32.mrf.mxu3 }
  0x9d   : > { %v408_v40 = vmul.f32 0.35355338, %v383_v38  ;;  %v347_v41 = vpop.f32.mrf.mxu0  ;;  %v366_v42 = vpop.f32.mrf.mxu1  ;;  %v409_v46 = vmul.f32 0.35355338, %v402_v39 }
  0x9f   : > { %v1043_v44 = vadd.f32 %v454_v37, %v408_v40  ;;  %v1047_v50 = vadd.f32 %v455_v45, %v409_v46  ;;  %v524_v45 = vld [vmem:[#allocation3] sm:$0xff] }
  0xa1   : > { %v470_v47 = vsel %vm312_vm0, %v1043_v44, -inf  ;;  %v473_v51 = vsel %vm312_vm0, %v1047_v50, -inf }
  0xa2   : > { %471 = vmax.xlane.f32.xlu2 %v470_v47 }
  0xa4   : > { %v385_v48 = vpop.f32.mrf.mxu2  ;;  %v404_v49 = vpop.f32.mrf.mxu3 }
  0xa5   : > { %v526_v49 = vld [vmem:[#allocation3 + $0x10] sm:$0xff] }
  0xaa   : > { %474 = vmax.xlane.f32.xlu2 %v473_v51 }
 0x10e   : > { %v469_v55 = vpop.xlane.xlu1 %468  ;;  %v466_v56 = vpop.xlane.xlu0 %465 }
 0x10f   : > { %v1064_v57 = vmax.f32 %v1059_v53, %v469_v55  ;;  %v1067_v58 = vmax.f32 %v1061_v54, %v466_v56  ;;  %v527_v55 = vld [vmem:[#allocation3 + $0x18] sm:$0xff] }
 0x111   : > { %v481_v59 = vsub.f32 %v1059_v53, %v1064_v57  ;;  %671 = vst.msk [vmem:[#allocation2 + $0x8] sm:$0xff] %vm303_vm1, %v1064_v57  ;;  %v480_v60 = vsub.f32 %v1061_v54, %v1067_v58  ;;  %494 = vperm.xlu2 %902, %v1067_v58  }
 0x112   : > { %670 = vst.msk [vmem:[#allocation2] sm:$0xff] %vm303_vm1, %v1067_v58 }
 0x113   : > { %v486_v38 = vmul.f32 1.442695, %v481_v59  ;;  %v484_v40 = vmul.f32 1.442695, %v480_v60 }
 0x115   : > { %v472_v62 = vpop.xlane.xlu2 %471 }
 0x116   : > { %v1081_v63 = vmax.f32 %v1078_v61, %v472_v62  ;;  %v525_v62 = vld [vmem:[#allocation3 + $0x8] sm:$0xff] }
 0x118   : > { %v482_v0 = vsub.f32 %v1078_v61, %v1081_v63  ;;  %672 = vst.msk [vmem:[#allocation2 + $0x10] sm:$0xff] %vm303_vm1, %v1081_v63 }
 0x119   : > { %504 = vperm.xlu2 %902, %v1081_v63  }
 0x11a   : > { %v488_v42 = vmul.f32 1.442695, %v482_v0 }
 0x11d   : > { %v475_v2 = vpop.xlane.xlu2 %474 }
 0x11e   : > { %v479_v3 = vmax.f32 %v463_v1, %v475_v2 }
 0x120   : > { %v483_v4 = vsub.f32 %v463_v1, %v479_v3  ;;  %673 = vst.msk [vmem:[#allocation2 + $0x18] sm:$0xff] %vm303_vm1, %v479_v3 }
 0x121   : > { %509 = vperm.xlu2 %902, %v479_v3  }
 0x129   : > { %499 = vperm.xlu2 %902, %v1064_v57  }
 0x16b   : > { %v495_v13 = vpop.permute.xlu2 %494 }
 0x16c   : > { %v512_v14 = vsub.f32 %v1037_v34, %v495_v13 }
 0x16e   : > { %v516_v15 = vmul.f32 1.442695, %v512_v14 }
 0x170   : > { %907 = vpow2.f32 %v516_v15 }
 0x173   : > { %v505_v16 = vpop.permute.xlu2 %504 }
 0x174   : > { %v514_v17 = vsub.f32 %v1043_v44, %v505_v16  ;;  %v556_v16 = vld [vmem:[#allocation4 + $0x18] sm:$0xff] }
 0x176   : > { %v908_v18 = vpop.eup %907  ;;  %v520_v19 = vmul.f32 1.442695, %v514_v17 }
 0x177   : > { %v532_v20 = vsel %vm312_vm0, %v908_v18, 0.0  ;;  %v581_v21 = vpack.c.bf16 %v908_v18, %v908_v18 }
 0x178   : > { %909 = vpow2.f32 %v520_v19  ;;  %533 = vadd.xlane.f32.xlu0 %v532_v20 }
 0x179   : > { %863 = vmatmul.msk.bf16.vlgmr.msrb.gmra.mxu0 %vm312_vm0, %v581_v21  ;;  %v553_v21 = vld [vmem:[#allocation4] sm:$0xff] }
 0x17b   : > { %v510_v22 = vpop.permute.xlu2 %509 }
 0x17c   : > { %v515_v23 = vsub.f32 %v1047_v50, %v510_v22 }
 0x17e   : > { %v910_v24 = vpop.eup %909  ;;  %v522_v25 = vmul.f32 1.442695, %v515_v23 }
 0x17f   : > { %v538_v26 = vsel %vm312_vm0, %v910_v24, 0.0  ;;  %v583_v27 = vpack.c.bf16 %v910_v24, %v910_v24 }
 0x180   : > { %911 = vpow2.f32 %v522_v25  ;;  %539 = vadd.xlane.f32.xlu2 %v538_v26  ;;  %v555_v25 = vld [vmem:[#allocation4 + $0x10] sm:$0xff] }
 0x181   : > { %865 = vmatmul.msk.bf16.vlgmr.msrb.gmra.mxu2 %vm312_vm0, %v583_v27 }
 0x183   : > { %v500_v28 = vpop.permute.xlu2 %499 }
 0x184   : > { %v513_v29 = vsub.f32 %v1035_v33, %v500_v28  ;;  %v490_v33 = vmul.f32 1.442695, %v483_v4 }
 0x186   : > { %v912_v30 = vpop.eup %911  ;;  %v518_v31 = vmul.f32 1.442695, %v513_v29 }
 0x187   : > { %v541_v32 = vsel %vm312_vm0, %v912_v30, 0.0  ;;  %v584_v34 = vpack.c.bf16 %v912_v30, %v912_v30 }
 0x188   : > { %913 = vpow2.f32 %v518_v31  ;;  %542 = vadd.xlane.f32.xlu0 %v541_v32 }
 0x189   : > { %866 = vmatmul.msk.bf16.vlgmr.msrb.gmra.mxu3 %vm312_vm0, %v584_v34  ;;  %915 = vpow2.f32 %v486_v38 }
 0x18a   : > { %917 = vpow2.f32 %v490_v33 }
 0x18b   : > { %919 = vpow2.f32 %v484_v40 }
 0x18c   : > { %921 = vpow2.f32 %v488_v42 }
 0x18e   : > { %v914_v35 = vpop.eup %913 }
 0x18f   : > { %v535_v36 = vsel %vm312_vm0, %v914_v35, 0.0  ;;  %v582_v37 = vpack.c.bf16 %v914_v35, %v914_v35  ;;  %v916_v39 = vpop.eup %915 }
 0x190   : > { %536 = vadd.xlane.f32.xlu1 %v535_v36  ;;  %v918_v41 = vpop.eup %917  ;;  %v529_v63 = vmul.f32 %v916_v39, %v525_v62 }
 0x191   : > { %864 = vmatmul.msk.bf16.vlgmr.msrb.gmra.mxu1 %vm312_vm0, %v582_v37  ;;  %v920_v43 = vpop.eup %919  ;;  %v531_v56 = vmul.f32 %v918_v41, %v527_v55 }
 0x192   : > { %v922_v44 = vpop.eup %921  ;;  %v528_v46 = vmul.f32 %v920_v43, %v524_v45 }
 0x193   : > { %v530_v50 = vmul.f32 %v922_v44, %v526_v49 }
 0x19c   : > { %564 = vperm.xlu0 %900, %v916_v39  }
 0x1a4   : > { %574 = vperm.xlu0 %900, %v918_v41  }
 0x1a9   : > { %559 = vperm.xlu1 %901, %v920_v43  }
 0x1b1   : > { %569 = vperm.xlu1 %901, %v922_v44  }
 0x1eb   : > { %v534_v47 = vpop.xlane.xlu0 %533 }
 0x1ec   : > { %v544_v48 = vadd.f32 %v534_v47, %v528_v46 }
 0x1ee   : > { %549 = vst.msk [vmem:[#allocation3] sm:$0xff] %vm303_vm1, %v544_v48 }
 0x1f3   : > { %v540_v51 = vpop.xlane.xlu2 %539 }
 0x1f4   : > { %v546_v52 = vadd.f32 %v540_v51, %v530_v50 }
 0x1f5   : > { %v681_v53 = vld [vmem:[#allocation3] sm:$0xff] }
 0x1f6   : > { %551 = vst.msk [vmem:[#allocation3 + $0x10] sm:$0xff] %vm303_vm1, %v546_v52  ;;  %v601_v54 = vpop.f32.mrf.mxu0  ;;  %923 = vrcp.f32 %v681_v53 }
 0x1fb   : > { %v543_v57 = vpop.xlane.xlu0 %542 }
 0x1fc   : > { %v924_v58 = vpop.eup %923  ;;  %v547_v59 = vadd.f32 %v543_v57, %v531_v56 }
 0x1fd   : > { %691 = vperm.xlu1 %901, %v924_v58   ;;  %v683_v60 = vld [vmem:[#allocation3 + $0x10] sm:$0xff] }
 0x1fe   : > { %552 = vst.msk [vmem:[#allocation3 + $0x18] sm:$0xff] %vm303_vm1, %v547_v59  ;;  %v603_v61 = vpop.f32.mrf.mxu0  ;;  %925 = vrcp.f32 %v683_v60 }
 0x203   : > { %v537_v0 = vpop.xlane.xlu1 %536 }
 0x204   : > { %v926_v1 = vpop.eup %925  ;;  %v545_v2 = vadd.f32 %v537_v0, %v529_v63  ;;  %v639_v3 = vpop.f32.mrf.mxu2 }
 0x205   : > { %701 = vperm.xlu2 %902, %v926_v1   ;;  %v684_v4 = vld [vmem:[#allocation3 + $0x18] sm:$0xff] }
 0x206   : > { %550 = vst.msk [vmem:[#allocation3 + $0x8] sm:$0xff] %vm303_vm1, %v545_v2  ;;  %927 = vrcp.f32 %v684_v4 }
 0x20c   : > { %v928_v5 = vpop.eup %927  ;;  %v641_v6 = vpop.f32.mrf.mxu2 }
 0x20d   : > { %v658_v7 = vpop.f32.mrf.mxu3  ;;  %706 = vperm.xlu1 %901, %v928_v5   ;;  %v682_v9 = vld [vmem:[#allocation3 + $0x8] sm:$0xff] }
 0x20e   : > { %v565_v10 = vpop.permute.xlu0 %564  ;;  %v620_v11 = vpop.f32.mrf.mxu1  ;;  %929 = vrcp.f32 %v682_v9 }
 0x20f   : > { %v578_v12 = vmul.f32 %v565_v10, %v554_v8 }
 0x211   : > { %v663_v13 = vadd.f32 %v620_v11, %v578_v12 }
 0x213   : > { %667 = vst.msk [vmem:[#allocation4 + $0x8] sm:$0xff] %vm312_vm0, %v663_v13 }
 0x214   : > { %v930_v14 = vpop.eup %929 }
 0x215   : > { %v660_v15 = vpop.f32.mrf.mxu3  ;;  %696 = vperm.xlu0 %900, %v930_v14  }
 0x216   : > { %v575_v17 = vpop.permute.xlu0 %574  ;;  %v622_v18 = vpop.f32.mrf.mxu1 }
 0x217   : > { %v580_v19 = vmul.f32 %v575_v17, %v556_v16 }
 0x219   : > { %v665_v20 = vadd.f32 %v658_v7, %v580_v19 }
 0x21a   : > { %v678_v41 = vld [vmem:[#allocation4 + $0x8] sm:$0xff] }
 0x21b   : > { %669 = vst.msk [vmem:[#allocation4 + $0x18] sm:$0xff] %vm312_vm0, %v665_v20  ;;  %v560_v22 = vpop.permute.xlu1 %559 }
 0x21c   : > { %v577_v23 = vmul.f32 %v560_v22, %v553_v21 }
 0x21e   : > { %v662_v24 = vadd.f32 %v601_v54, %v577_v23 }
 0x220   : > { %666 = vst.msk [vmem:[#allocation4] sm:$0xff] %vm312_vm0, %v662_v24 }
 0x222   : > { %v680_v38 = vld [vmem:[#allocation4 + $0x18] sm:$0xff] }
 0x223   : > { %v570_v26 = vpop.permute.xlu1 %569 }
 0x224   : > { %v579_v27 = vmul.f32 %v570_v26, %v555_v25 }
 0x226   : > { %v664_v28 = vadd.f32 %v639_v3, %v579_v27 }
 0x227   : > { %v677_v35 = vld [vmem:[#allocation4] sm:$0xff] }
 0x228   : > { %668 = vst.msk [vmem:[#allocation4 + $0x10] sm:$0xff] %vm312_vm0, %v664_v28 }
 0x22f   : > { %v679_v30 = vld [vmem:[#allocation4 + $0x10] sm:$0xff] }
 0x25f   : > { %v702_v29 = vpop.permute.xlu2 %701 }
 0x260   : > { %v711_v31 = vmul.f32 %v702_v29, %v679_v30 }
 0x262   : > { %v715_v32 = vpack.c.bf16 %v711_v31, %v711_v31 }
 0x264   : > { %720 = vst.msk [vmem:[%s297_s13 + $0x8] sm:$0xf] %vm717_vm4, %v715_v32 }
 0x26f   : > { %v692_v34 = vpop.permute.xlu1 %691 }
 0x270   : > { %v709_v36 = vmul.f32 %v692_v34, %v677_v35 }
 0x272   : > { %v713_v37 = vpack.c.bf16 %v709_v36, %v709_v36 }
 0x274   : > { %718 = vst.msk [vmem:[%s297_s13] sm:$0xf] %vm717_vm4, %v713_v37 }
 0x27f   : > { %v707_v33 = vpop.permute.xlu1 %706 }
 0x280   : > { %v712_v39 = vmul.f32 %v707_v33, %v680_v38 }
 0x282   : > { %v716_v40 = vpack.c.bf16 %v712_v39, %v712_v39 }
 0x284   : > { %721 = vst.msk [vmem:[%s297_s13 + $0xc] sm:$0xf] %vm717_vm4, %v716_v40 }
 0x287   : > { %v697_v42 = vpop.permute.xlu0 %696 }
 0x288   : > { %v710_v43 = vmul.f32 %v697_v42, %v678_v41 }
 0x28a   : > { %v714_v44 = vpack.c.bf16 %v710_v43, %v710_v43 }
 0x28c   : > { %719 = vst.msk [vmem:[%s297_s13 + $0x4] sm:$0xf] %vm717_vm4, %v714_v44 }
 0x28d PF: > { %s14_s17 = sadd.s32 1, %s953_s17   ;;  %s1145_s15 = smov %s949_s16 }
 0x28e   : > { %p11_p5 = scmp.ge.s32.totalorder %s14_s17, 4   ;;  %s1146_s16 = smov %s1148_s18 }
 0x290   :  { %13 = sbr.rel (!%p11_p5) target bundleno = 2 (0x2), region = 80 }

</bundles_post_ra>
